<compile_context>
chip_gen: v6e
topology: v6e:2x2x1
jax: 0.10.0
libtpu: 0.0.40
codegen_flags: <defaults>
</compile_context>

<pallas_src>
import functools
import math

import jax
import jax.numpy as jnp
from jax import lax
from jax.experimental import pallas as pl
from jax.experimental.pallas import tpu as pltpu


# -----------------------------------------------------------------------------
# Kernel 1: 2-layer LSTM recurrence (PyTorch gate order i, f, g, o).
# Single invocation; time iterated with an in-kernel (unrolled) fori_loop.
# Inputs:
#   xg_ref   : (S, B, 4H)  pre-computed  x_t @ Wih0^T + b0   (layer-0 input gates)
#   h0_ref   : (2, B, H)   initial hidden state (layer 0, layer 1)
#   c0_ref   : (2, B, H)   initial cell state
#   whh0_ref : (H, 4H)     Whh0^T (pre-transposed)
#   wih1_ref : (H, 4H)     Wih1^T
#   whh1_ref : (H, 4H)     Whh1^T
#   b1_ref   : (1, 4H)     fused layer-1 bias
# Outputs:
#   out_ref  : (S, B, H)   layer-1 hidden states for every timestep
#   hn_ref   : (2, B, H)   final hidden state
#   cn_ref   : (2, B, H)   final cell state
# -----------------------------------------------------------------------------
def lstm_kernel(xg_ref, h0_ref, c0_ref, whh0_ref, wih1_ref, whh1_ref, b1_ref,
                out_ref, hn_ref, cn_ref):
    S = xg_ref.shape[0]
    B = xg_ref.shape[1]
    H = hn_ref.shape[-1]

    # Weights / bias loaded once, reused every timestep (loop-invariant).
    whh0 = whh0_ref[...]                                   # (H, 4H)
    wih1 = wih1_ref[...]                                   # (H, 4H)
    whh1 = whh1_ref[...]                                   # (H, 4H)
    b1 = jnp.broadcast_to(b1_ref[...], (B, 4 * H))         # hoisted broadcast

    def gates_to_hc(gates, c_prev):
        i = jax.nn.sigmoid(gates[:, 0:H])
        f = jax.nn.sigmoid(gates[:, H:2 * H])
        g = jnp.tanh(gates[:, 2 * H:3 * H])
        o = jax.nn.sigmoid(gates[:, 3 * H:4 * H])
        c_new = f * c_prev + i * g
        h_new = o * jnp.tanh(c_new)
        return h_new, c_new

    def step(t, carry):
        h1, c1, h2, c2 = carry
        # layer 0: input projection already done (xg_ref), only h @ Whh^T here
        g1 = xg_ref[t] + jnp.dot(h1, whh0, preferred_element_type=jnp.float32)
        h1n, c1n = gates_to_hc(g1, c1)
        # layer 1 (inter-layer dropout skipped: eval mode)
        g2 = (jnp.dot(h1n, wih1, preferred_element_type=jnp.float32)
              + jnp.dot(h2, whh1, preferred_element_type=jnp.float32) + b1)
        h2n, c2n = gates_to_hc(g2, c2)
        out_ref[t] = h2n
        return (h1n, c1n, h2n, c2n)

    init = (h0_ref[0], c0_ref[0], h0_ref[1], c0_ref[1])    # hoisted state reads
    unroll = True if S <= 32 else 8
    h1, c1, h2, c2 = lax.fori_loop(0, S, step, init, unroll=unroll)

    hn_ref[0] = h1
    hn_ref[1] = h2
    cn_ref[0] = c1
    cn_ref[1] = c2


def lstm_forward(xg0, h0, c0, whh0_t, wih1_t, whh1_t, b1):
    S, B, _ = xg0.shape
    H = h0.shape[-1]
    out_shape = (jax.ShapeDtypeStruct((S, B, H), jnp.float32),
                 jax.ShapeDtypeStruct((2, B, H), jnp.float32),
                 jax.ShapeDtypeStruct((2, B, H), jnp.float32))
    return pl.pallas_call(
        lstm_kernel,
        out_shape=out_shape,
    )(xg0, h0, c0, whh0_t, wih1_t, whh1_t, b1)


# -----------------------------------------------------------------------------
# Kernel 2: GlobalAttention ("general" score, length mask, sigmoid since
# use_softmax=False) + linear_out + tanh.  Single invocation:
#   * weight projections (linear_in, linear_out query-part) computed flat over
#     the B*S query rows;
#   * phrase-bank interactions (scores / mask / sigmoid / context) per batch
#     element (B is small and static for this decoder).
# probs = sigmoid(logits) and the H->3 readout are done by XLA in the wrapper.
# -----------------------------------------------------------------------------
def attn_kernel(qf_ref, kb_ref, len_ref, win_ref, woutc_ref, woutq_ref,
                dec_ref, logit_ref):
    B, S, H = dec_ref.shape
    P = kb_ref.shape[1]

    qf = qf_ref[...]                                           # (B*S, H)
    woutc = woutc_ref[...]                                     # (E, H)

    # Flat projections over all B*S query rows (big MXU M dimension).
    q_proj = jnp.dot(qf, win_ref[...], preferred_element_type=jnp.float32)   # (B*S, E)
    qh = jnp.dot(qf, woutq_ref[...], preferred_element_type=jnp.float32)     # (B*S, H)

    pos = lax.broadcasted_iota(jnp.int32, (S, P), 1)

    # Static unroll over the (small) batch; for large batch this would become a
    # parallel grid axis instead.
    for b in range(B):
        qp_b = q_proj[b * S:(b + 1) * S, :]                    # (S, E) static slice
        kb_b = kb_ref[b]                                       # (P, E)

        # score(h_t, h_s) = (h_t W_in) h_s^T  -> contract on E without explicit .T
        scores = lax.dot_general(qp_b, kb_b, (((1,), (1,)), ((), ())),
                                 preferred_element_type=jnp.float32)         # (S, P)

        length = len_ref[b]                                    # scalar from SMEM
        masked = jnp.where(pos < length, scores, jnp.float32(-jnp.inf))
        logit_ref[b] = masked

        probs = jax.nn.sigmoid(masked)                         # use_softmax=False
        ctx = jnp.dot(probs, kb_b, preferred_element_type=jnp.float32)       # (S, E)

        # linear_out([c; q]) -> tanh   (concat-matmul split; query part hoisted)
        dec_ref[b] = jnp.tanh(
            jnp.dot(ctx, woutc, preferred_element_type=jnp.float32)
            + qh[b * S:(b + 1) * S, :])


def attn_forward(qf, phrase_bank, phrase_lengths, win_t, woutc_t, woutq_t, S):
    B, P, _ = phrase_bank.shape
    H = qf.shape[-1]
    vmem = pl.BlockSpec(memory_space=pltpu.MemorySpace.VMEM)
    smem = pl.BlockSpec(memory_space=pltpu.MemorySpace.SMEM)
    out_shape = (jax.ShapeDtypeStruct((B, S, H), jnp.float32),
                 jax.ShapeDtypeStruct((B, S, P), jnp.float32))
    return pl.pallas_call(
        attn_kernel,
        out_shape=out_shape,
        in_specs=[vmem, vmem, smem, vmem, vmem, vmem],
        out_specs=(vmem, vmem),
    )(qf, phrase_bank, phrase_lengths, win_t, woutc_t, woutq_t)


# -----------------------------------------------------------------------------
# Full SentencePlanner forward (_run_forward_pass + forward)
# -----------------------------------------------------------------------------
def sentence_planner_forward(params, ph_sel, phrase_bank, phrase_lengths, h0, c0):
    # embedding + sum over phrase tokens and phrases-per-sentence (plain-JAX glue)
    emb = params['word_emb'][ph_sel]            # (B, S, Pp, L, E)
    ph_sel_emb = jnp.sum(emb, axis=-2)          # (B, S, Pp, E)
    ph_sum_emb = jnp.sum(ph_sel_emb, axis=-2)   # (B, S, E)
    B, S, _ = ph_sum_emb.shape
    H = h0.shape[-1]

    # --- 2-layer LSTM -------------------------------------------------------
    x_sbe = jnp.transpose(ph_sum_emb, (1, 0, 2))                      # (S, B, E)
    # Hoisted layer-0 input projection + bias: one batched matmul for all steps.
    xg0 = jnp.einsum('sbe,ge->sbg', x_sbe, params['wih0']) + params['b0']   # (S, B, 4H)

    # Pre-transposed weights so in-kernel dots need no `.T`.
    whh0_t = params['whh0'].T
    wih1_t = params['wih1'].T
    whh1_t = params['whh1'].T

    rnn_out_sbh, h_n, c_n = lstm_forward(
        xg0, h0, c0, whh0_t, wih1_t, whh1_t, params['b1'])
    rnn_out = jnp.transpose(rnn_out_sbh, (1, 0, 2))                   # (B, S, H)
    qf = rnn_out.reshape(B * S, H)                                    # flat queries

    # --- attention ----------------------------------------------------------
    dec_outs, ph_attn_logits = attn_forward(
        qf, phrase_bank, phrase_lengths.astype(jnp.int32),
        params['w_in'].T, params['wout_c'].T, params['wout_q'].T, S)

    # cheap / lane-sparse epilogue kept in XLA
    ph_attn_probs = jax.nn.sigmoid(ph_attn_logits)
    stype_logits = jnp.einsum('bsh,kh->bsk', dec_outs, params['w_ro']) + params['b_ro']

    dec_state = (h_n, c_n)
    return dec_state, dec_outs, ph_attn_probs, ph_attn_logits, stype_logits


# -----------------------------------------------------------------------------
# Pure-JAX reference (for correctness check)
# -----------------------------------------------------------------------------
def reference_forward(params, ph_sel, phrase_bank, phrase_lengths, h0, c0):
    emb = params['word_emb'][ph_sel]
    ph_sum = jnp.sum(jnp.sum(emb, axis=-2), axis=-2)          # (B, S, E)

    def cell(x, h, c, wih, whh, b):
        g = x @ wih.T + h @ whh.T + b
        i, f, gg, o = jnp.split(g, 4, axis=-1)
        c_new = jax.nn.sigmoid(f) * c + jax.nn.sigmoid(i) * jnp.tanh(gg)
        h_new = jax.nn.sigmoid(o) * jnp.tanh(c_new)
        return h_new, c_new

    def step(carry, x_t):
        h1, c1, h2, c2 = carry
        h1, c1 = cell(x_t, h1, c1, params['wih0'], params['whh0'], params['b0'])
        h2, c2 = cell(h1, h2, c2, params['wih1'], params['whh1'], params['b1'])
        return (h1, c1, h2, c2), h2

    carry0 = (h0[0], c0[0], h0[1], c0[1])
    (h1, c1, h2, c2), outs = lax.scan(step, carry0, jnp.transpose(ph_sum, (1, 0, 2)))
    rnn_out = jnp.transpose(outs, (1, 0, 2))
    h_n = jnp.stack([h1, h2]); c_n = jnp.stack([c1, c2])

    P = phrase_bank.shape[1]
    q_proj = rnn_out @ params['w_in'].T
    scores = jnp.einsum('bse,bpe->bsp', q_proj, phrase_bank)
    mask = jnp.arange(P)[None, None, :] < phrase_lengths[:, None, None]
    masked = jnp.where(mask, scores, jnp.float32(-jnp.inf))
    probs = jax.nn.sigmoid(masked)
    ctx = jnp.einsum('bsp,bpe->bse', probs, phrase_bank)
    attn_h = jnp.tanh(ctx @ params['wout_c'].T + rnn_out @ params['wout_q'].T)
    stype = attn_h @ params['w_ro'].T + params['b_ro']
    return (h_n, c_n), attn_h, probs, masked, stype


# -----------------------------------------------------------------------------
if __name__ == "__main__":
    # sizes
    B, S, Pp, L = 2, 4, 3, 5        # batch, max_sent_num, max_ph_per_sent, max_ph_len
    VOCAB, E, H, P = 20, 16, 32, 8  # vocab, word_emb_size, hidden_size, max_ph_bank_size

    key = jax.random.PRNGKey(0)
    ks = jax.random.split(key, 20)
    sc = 1.0 / math.sqrt(H)
    u = lambda k, shape: jax.random.uniform(k, shape, jnp.float32, -sc, sc)

    params = {
        'word_emb': u(ks[0], (VOCAB, E)),
        # LSTM layer 0 / layer 1 (PyTorch i,f,g,o gate packing, biases fused)
        'wih0': u(ks[1], (4 * H, E)),
        'whh0': u(ks[2], (4 * H, H)),
        'b0':   u(ks[3], (1, 4 * H)),
        'wih1': u(ks[4], (4 * H, H)),
        'whh1': u(ks[5], (4 * H, H)),
        'b1':   u(ks[6], (1, 4 * H)),
        # GlobalAttention: linear_in (H -> E, no bias), linear_out (E+H -> H, no bias)
        'w_in':   u(ks[7], (E, H)),
        'wout_c': u(ks[8], (H, E)),
        'wout_q': u(ks[9], (H, H)),
        # readout Linear(H -> 3, bias=True)
        'w_ro': u(ks[10], (3, H)),
        'b_ro': u(ks[11], (1, 3)),
    }

    ph_sel = jax.random.randint(ks[12], (B, S, Pp, L), 0, VOCAB, jnp.int32)
    phrase_bank = jax.random.normal(ks[13], (B, P, E), jnp.float32)
    phrase_lengths = jnp.array([P, P - 3], dtype=jnp.int32)
    # decoder init state (would come from init_state(encoder_final) in PyTorch)
    h0 = jax.random.normal(ks[14], (2, B, H), jnp.float32) * 0.1
    c0 = jax.random.normal(ks[15], (2, B, H), jnp.float32) * 0.1

    run = jax.jit(functools.partial(sentence_planner_forward, params))
    dec_state, dec_outs, attns, attn_raw, readouts = run(
        ph_sel, phrase_bank, phrase_lengths, h0, c0)
    jax.block_until_ready((dec_state, dec_outs, attns, attn_raw, readouts))

    # correctness check vs pure-JAX reference
    ref_state, ref_dec, ref_probs, ref_logits, ref_stype = reference_forward(
        params, ph_sel, phrase_bank, phrase_lengths, h0, c0)
    import numpy as np
    np.testing.assert_allclose(dec_state[0], ref_state[0], atol=2e-3, rtol=2e-3)
    np.testing.assert_allclose(dec_state[1], ref_state[1], atol=2e-3, rtol=2e-3)
    np.testing.assert_allclose(dec_outs, ref_dec, atol=2e-3, rtol=2e-3)
    np.testing.assert_allclose(attns, ref_probs, atol=2e-3, rtol=2e-3)
    np.testing.assert_allclose(attn_raw, ref_logits, atol=2e-3, rtol=2e-3)
    np.testing.assert_allclose(readouts, ref_stype, atol=2e-3, rtol=2e-3)

    print("KERNEL_OK")
</pallas_src>

<mosaic_0001>
module attributes {stable_mosaic.version = 11 : i64} {
  func.func @lstm_kernel(%arg0: memref<4x2x128xf32, #tpu.memory_space<vmem>>, %arg1: memref<2x2x32xf32, #tpu.memory_space<vmem>>, %arg2: memref<2x2x32xf32, #tpu.memory_space<vmem>>, %arg3: memref<32x128xf32, #tpu.memory_space<vmem>>, %arg4: memref<32x128xf32, #tpu.memory_space<vmem>>, %arg5: memref<32x128xf32, #tpu.memory_space<vmem>>, %arg6: memref<1x128xf32, #tpu.memory_space<vmem>>, %arg7: memref<4x2x32xf32, #tpu.memory_space<vmem>>, %arg8: memref<2x2x32xf32, #tpu.memory_space<vmem>>, %arg9: memref<2x2x32xf32, #tpu.memory_space<vmem>>) attributes {dimension_semantics = [], scalar_prefetch = 0 : i64, scratch_operands = 0 : i64, tpu.core_type = #tpu.core_type<tc>} {
    %c0 = arith.constant 0 : index
    %c0_0 = arith.constant 0 : index
    %0 = vector.load %arg3[%c0, %c0_0] : memref<32x128xf32, #tpu.memory_space<vmem>>, vector<32x128xf32>
    %c0_1 = arith.constant 0 : index
    %c0_2 = arith.constant 0 : index
    %1 = vector.load %arg4[%c0_1, %c0_2] : memref<32x128xf32, #tpu.memory_space<vmem>>, vector<32x128xf32>
    %c0_3 = arith.constant 0 : index
    %c0_4 = arith.constant 0 : index
    %2 = vector.load %arg5[%c0_3, %c0_4] : memref<32x128xf32, #tpu.memory_space<vmem>>, vector<32x128xf32>
    %c0_5 = arith.constant 0 : index
    %c0_6 = arith.constant 0 : index
    %3 = vector.load %arg6[%c0_5, %c0_6] : memref<1x128xf32, #tpu.memory_space<vmem>>, vector<1x128xf32>
    %4 = vector.shape_cast %3 : vector<1x128xf32> to vector<1x128xf32>
    %5 = vector.broadcast %4 : vector<1x128xf32> to vector<2x128xf32>
    %c0_7 = arith.constant 0 : index
    %c0_8 = arith.constant 0 : index
    %c0_9 = arith.constant 0 : index
    %6 = vector.load %arg1[%c0_7, %c0_8, %c0_9] : memref<2x2x32xf32, #tpu.memory_space<vmem>>, vector<1x2x32xf32>
    %7 = vector.shape_cast %6 : vector<1x2x32xf32> to vector<2x32xf32>
    %c0_10 = arith.constant 0 : index
    %c0_11 = arith.constant 0 : index
    %c0_12 = arith.constant 0 : index
    %8 = vector.load %arg2[%c0_10, %c0_11, %c0_12] : memref<2x2x32xf32, #tpu.memory_space<vmem>>, vector<1x2x32xf32>
    %9 = vector.shape_cast %8 : vector<1x2x32xf32> to vector<2x32xf32>
    %c1 = arith.constant 1 : index
    %c0_13 = arith.constant 0 : index
    %c0_14 = arith.constant 0 : index
    %10 = vector.load %arg1[%c1, %c0_13, %c0_14] : memref<2x2x32xf32, #tpu.memory_space<vmem>>, vector<1x2x32xf32>
    %11 = vector.shape_cast %10 : vector<1x2x32xf32> to vector<2x32xf32>
    %c1_15 = arith.constant 1 : index
    %c0_16 = arith.constant 0 : index
    %c0_17 = arith.constant 0 : index
    %12 = vector.load %arg2[%c1_15, %c0_16, %c0_17] : memref<2x2x32xf32, #tpu.memory_space<vmem>>, vector<1x2x32xf32>
    %13 = vector.shape_cast %12 : vector<1x2x32xf32> to vector<2x32xf32>
    %c0_i32 = arith.constant 0 : i32
    %14 = arith.index_cast %c0_i32 : i32 to index
    %c0_18 = arith.constant 0 : index
    %c0_19 = arith.constant 0 : index
    %15 = vector.load %arg0[%14, %c0_18, %c0_19] : memref<4x2x128xf32, #tpu.memory_space<vmem>>, vector<1x2x128xf32>
    %16 = vector.shape_cast %15 : vector<1x2x128xf32> to vector<2x128xf32>
    %cst = arith.constant dense<0.000000e+00> : vector<2x128xf32>
    %17 = tpu.matmul %7, %0, %cst {dimension_numbers = #tpu.dot_dimension_numbers<[1], [0], [0], [1], [0, 0, 1, 1], [], []>} : vector<2x32xf32>, vector<32x128xf32>, vector<2x128xf32> -> vector<2x128xf32>
    %18 = arith.addf %16, %17 : vector<2x128xf32>
    %19 = vector.extract_strided_slice %18 {offsets = [0, 0], sizes = [2, 32], strides = [1, 1]} : vector<2x128xf32> to vector<2x32xf32>
    %20 = arith.negf %19 : vector<2x32xf32>
    %21 = math.exp %20 : vector<2x32xf32>
    %cst_20 = arith.constant 1.000000e+00 : f32
    %22 = vector.broadcast %cst_20 : f32 to vector<2x32xf32>
    %23 = arith.addf %22, %21 : vector<2x32xf32>
    %24 = arith.divf %22, %23 : vector<2x32xf32>
    %25 = vector.extract_strided_slice %18 {offsets = [0, 32], sizes = [2, 32], strides = [1, 1]} : vector<2x128xf32> to vector<2x32xf32>
    %26 = arith.negf %25 : vector<2x32xf32>
    %27 = math.exp %26 : vector<2x32xf32>
    %cst_21 = arith.constant 1.000000e+00 : f32
    %28 = vector.broadcast %cst_21 : f32 to vector<2x32xf32>
    %29 = arith.addf %28, %27 : vector<2x32xf32>
    %30 = arith.divf %28, %29 : vector<2x32xf32>
    %31 = vector.extract_strided_slice %18 {offsets = [0, 64], sizes = [2, 32], strides = [1, 1]} : vector<2x128xf32> to vector<2x32xf32>
    %32 = math.tanh %31 : vector<2x32xf32>
    %33 = vector.extract_strided_slice %18 {offsets = [0, 96], sizes = [2, 32], strides = [1, 1]} : vector<2x128xf32> to vector<2x32xf32>
    %34 = arith.negf %33 : vector<2x32xf32>
    %35 = math.exp %34 : vector<2x32xf32>
    %cst_22 = arith.constant 1.000000e+00 : f32
    %36 = vector.broadcast %cst_22 : f32 to vector<2x32xf32>
    %37 = arith.addf %36, %35 : vector<2x32xf32>
    %38 = arith.divf %36, %37 : vector<2x32xf32>
    %39 = arith.mulf %30, %9 : vector<2x32xf32>
    %40 = arith.mulf %24, %32 : vector<2x32xf32>
    %41 = arith.addf %39, %40 : vector<2x32xf32>
    %42 = math.tanh %41 : vector<2x32xf32>
    %43 = arith.mulf %38, %42 : vector<2x32xf32>
    %cst_23 = arith.constant dense<0.000000e+00> : vector<2x128xf32>
    %44 = tpu.matmul %43, %1, %cst_23 {dimension_numbers = #tpu.dot_dimension_numbers<[1], [0], [0], [1], [0, 0, 1, 1], [], []>} : vector<2x32xf32>, vector<32x128xf32>, vector<2x128xf32> -> vector<2x128xf32>
    %cst_24 = arith.constant dense<0.000000e+00> : vector<2x128xf32>
    %45 = tpu.matmul %11, %2, %cst_24 {dimension_numbers = #tpu.dot_dimension_numbers<[1], [0], [0], [1], [0, 0, 1, 1], [], []>} : vector<2x32xf32>, vector<32x128xf32>, vector<2x128xf32> -> vector<2x128xf32>
    %46 = arith.addf %44, %45 : vector<2x128xf32>
    %47 = arith.addf %46, %5 : vector<2x128xf32>
    %48 = vector.extract_strided_slice %47 {offsets = [0, 0], sizes = [2, 32], strides = [1, 1]} : vector<2x128xf32> to vector<2x32xf32>
    %49 = arith.negf %48 : vector<2x32xf32>
    %50 = math.exp %49 : vector<2x32xf32>
    %cst_25 = arith.constant 1.000000e+00 : f32
    %51 = vector.broadcast %cst_25 : f32 to vector<2x32xf32>
    %52 = arith.addf %51, %50 : vector<2x32xf32>
    %53 = arith.divf %51, %52 : vector<2x32xf32>
    %54 = vector.extract_strided_slice %47 {offsets = [0, 32], sizes = [2, 32], strides = [1, 1]} : vector<2x128xf32> to vector<2x32xf32>
    %55 = arith.negf %54 : vector<2x32xf32>
    %56 = math.exp %55 : vector<2x32xf32>
    %cst_26 = arith.constant 1.000000e+00 : f32
    %57 = vector.broadcast %cst_26 : f32 to vector<2x32xf32>
    %58 = arith.addf %57, %56 : vector<2x32xf32>
    %59 = arith.divf %57, %58 : vector<2x32xf32>
    %60 = vector.extract_strided_slice %47 {offsets = [0, 64], sizes = [2, 32], strides = [1, 1]} : vector<2x128xf32> to vector<2x32xf32>
    %61 = math.tanh %60 : vector<2x32xf32>
    %62 = vector.extract_strided_slice %47 {offsets = [0, 96], sizes = [2, 32], strides = [1, 1]} : vector<2x128xf32> to vector<2x32xf32>
    %63 = arith.negf %62 : vector<2x32xf32>
    %64 = math.exp %63 : vector<2x32xf32>
    %cst_27 = arith.constant 1.000000e+00 : f32
    %65 = vector.broadcast %cst_27 : f32 to vector<2x32xf32>
    %66 = arith.addf %65, %64 : vector<2x32xf32>
    %67 = arith.divf %65, %66 : vector<2x32xf32>
    %68 = arith.mulf %59, %13 : vector<2x32xf32>
    %69 = arith.mulf %53, %61 : vector<2x32xf32>
    %70 = arith.addf %68, %69 : vector<2x32xf32>
    %71 = math.tanh %70 : vector<2x32xf32>
    %72 = arith.mulf %67, %71 : vector<2x32xf32>
    %73 = arith.index_cast %c0_i32 : i32 to index
    %c0_28 = arith.constant 0 : index
    %c0_29 = arith.constant 0 : index
    %74 = vector.load %arg7[%73, %c0_28, %c0_29] : memref<4x2x32xf32, #tpu.memory_space<vmem>>, vector<1x2x32xf32>
    %75 = vector.shape_cast %74 : vector<1x2x32xf32> to vector<2x32xf32>
    %76 = vector.shape_cast %72 : vector<2x32xf32> to vector<1x2x32xf32>
    tpu.vector_store %arg7[%73, %c0_28, %c0_29], %76 {strides = array<i32>} : memref<4x2x32xf32, #tpu.memory_space<vmem>>, vector<1x2x32xf32>,
    %c1_i32 = arith.constant 1 : i32
    %77 = arith.index_cast %c1_i32 : i32 to index
    %c0_30 = arith.constant 0 : index
    %c0_31 = arith.constant 0 : index
    %78 = vector.load %arg0[%77, %c0_30, %c0_31] : memref<4x2x128xf32, #tpu.memory_space<vmem>>, vector<1x2x128xf32>
    %79 = vector.shape_cast %78 : vector<1x2x128xf32> to vector<2x128xf32>
    %cst_32 = arith.constant dense<0.000000e+00> : vector<2x128xf32>
    %80 = tpu.matmul %43, %0, %cst_32 {dimension_numbers = #tpu.dot_dimension_numbers<[1], [0], [0], [1], [0, 0, 1, 1], [], []>} : vector<2x32xf32>, vector<32x128xf32>, vector<2x128xf32> -> vector<2x128xf32>
    %81 = arith.addf %79, %80 : vector<2x128xf32>
    %82 = vector.extract_strided_slice %81 {offsets = [0, 0], sizes = [2, 32], strides = [1, 1]} : vector<2x128xf32> to vector<2x32xf32>
    %83 = arith.negf %82 : vector<2x32xf32>
    %84 = math.exp %83 : vector<2x32xf32>
    %cst_33 = arith.constant 1.000000e+00 : f32
    %85 = vector.broadcast %cst_33 : f32 to vector<2x32xf32>
    %86 = arith.addf %85, %84 : vector<2x32xf32>
    %87 = arith.divf %85, %86 : vector<2x32xf32>
    %88 = vector.extract_strided_slice %81 {offsets = [0, 32], sizes = [2, 32], strides = [1, 1]} : vector<2x128xf32> to vector<2x32xf32>
    %89 = arith.negf %88 : vector<2x32xf32>
    %90 = math.exp %89 : vector<2x32xf32>
    %cst_34 = arith.constant 1.000000e+00 : f32
    %91 = vector.broadcast %cst_34 : f32 to vector<2x32xf32>
    %92 = arith.addf %91, %90 : vector<2x32xf32>
    %93 = arith.divf %91, %92 : vector<2x32xf32>
    %94 = vector.extract_strided_slice %81 {offsets = [0, 64], sizes = [2, 32], strides = [1, 1]} : vector<2x128xf32> to vector<2x32xf32>
    %95 = math.tanh %94 : vector<2x32xf32>
    %96 = vector.extract_strided_slice %81 {offsets = [0, 96], sizes = [2, 32], strides = [1, 1]} : vector<2x128xf32> to vector<2x32xf32>
    %97 = arith.negf %96 : vector<2x32xf32>
    %98 = math.exp %97 : vector<2x32xf32>
    %cst_35 = arith.constant 1.000000e+00 : f32
    %99 = vector.broadcast %cst_35 : f32 to vector<2x32xf32>
    %100 = arith.addf %99, %98 : vector<2x32xf32>
    %101 = arith.divf %99, %100 : vector<2x32xf32>
    %102 = arith.mulf %93, %41 : vector<2x32xf32>
    %103 = arith.mulf %87, %95 : vector<2x32xf32>
    %104 = arith.addf %102, %103 : vector<2x32xf32>
    %105 = math.tanh %104 : vector<2x32xf32>
    %106 = arith.mulf %101, %105 : vector<2x32xf32>
    %cst_36 = arith.constant dense<0.000000e+00> : vector<2x128xf32>
    %107 = tpu.matmul %106, %1, %cst_36 {dimension_numbers = #tpu.dot_dimension_numbers<[1], [0], [0], [1], [0, 0, 1, 1], [], []>} : vector<2x32xf32>, vector<32x128xf32>, vector<2x128xf32> -> vector<2x128xf32>
    %cst_37 = arith.constant dense<0.000000e+00> : vector<2x128xf32>
    %108 = tpu.matmul %72, %2, %cst_37 {dimension_numbers = #tpu.dot_dimension_numbers<[1], [0], [0], [1], [0, 0, 1, 1], [], []>} : vector<2x32xf32>, vector<32x128xf32>, vector<2x128xf32> -> vector<2x128xf32>
    %109 = arith.addf %107, %108 : vector<2x128xf32>
    %110 = arith.addf %109, %5 : vector<2x128xf32>
    %111 = vector.extract_strided_slice %110 {offsets = [0, 0], sizes = [2, 32], strides = [1, 1]} : vector<2x128xf32> to vector<2x32xf32>
    %112 = arith.negf %111 : vector<2x32xf32>
    %113 = math.exp %112 : vector<2x32xf32>
    %cst_38 = arith.constant 1.000000e+00 : f32
    %114 = vector.broadcast %cst_38 : f32 to vector<2x32xf32>
    %115 = arith.addf %114, %113 : vector<2x32xf32>
    %116 = arith.divf %114, %115 : vector<2x32xf32>
    %117 = vector.extract_strided_slice %110 {offsets = [0, 32], sizes = [2, 32], strides = [1, 1]} : vector<2x128xf32> to vector<2x32xf32>
    %118 = arith.negf %117 : vector<2x32xf32>
    %119 = math.exp %118 : vector<2x32xf32>
    %cst_39 = arith.constant 1.000000e+00 : f32
    %120 = vector.broadcast %cst_39 : f32 to vector<2x32xf32>
    %121 = arith.addf %120, %119 : vector<2x32xf32>
    %122 = arith.divf %120, %121 : vector<2x32xf32>
    %123 = vector.extract_strided_slice %110 {offsets = [0, 64], sizes = [2, 32], strides = [1, 1]} : vector<2x128xf32> to vector<2x32xf32>
    %124 = math.tanh %123 : vector<2x32xf32>
    %125 = vector.extract_strided_slice %110 {offsets = [0, 96], sizes = [2, 32], strides = [1, 1]} : vector<2x128xf32> to vector<2x32xf32>
    %126 = arith.negf %125 : vector<2x32xf32>
    %127 = math.exp %126 : vector<2x32xf32>
    %cst_40 = arith.constant 1.000000e+00 : f32
    %128 = vector.broadcast %cst_40 : f32 to vector<2x32xf32>
    %129 = arith.addf %128, %127 : vector<2x32xf32>
    %130 = arith.divf %128, %129 : vector<2x32xf32>
    %131 = arith.mulf %122, %70 : vector<2x32xf32>
    %132 = arith.mulf %116, %124 : vector<2x32xf32>
    %133 = arith.addf %131, %132 : vector<2x32xf32>
    %134 = math.tanh %133 : vector<2x32xf32>
    %135 = arith.mulf %130, %134 : vector<2x32xf32>
    %136 = arith.index_cast %c1_i32 : i32 to index
    %c0_41 = arith.constant 0 : index
    %c0_42 = arith.constant 0 : index
    %137 = vector.load %arg7[%136, %c0_41, %c0_42] : memref<4x2x32xf32, #tpu.memory_space<vmem>>, vector<1x2x32xf32>
    %138 = vector.shape_cast %137 : vector<1x2x32xf32> to vector<2x32xf32>
    %139 = vector.shape_cast %135 : vector<2x32xf32> to vector<1x2x32xf32>
    tpu.vector_store %arg7[%136, %c0_41, %c0_42], %139 {strides = array<i32>} : memref<4x2x32xf32, #tpu.memory_space<vmem>>, vector<1x2x32xf32>,
    %c2_i32 = arith.constant 2 : i32
    %140 = arith.index_cast %c2_i32 : i32 to index
    %c0_43 = arith.constant 0 : index
    %c0_44 = arith.constant 0 : index
    %141 = vector.load %arg0[%140, %c0_43, %c0_44] : memref<4x2x128xf32, #tpu.memory_space<vmem>>, vector<1x2x128xf32>
    %142 = vector.shape_cast %141 : vector<1x2x128xf32> to vector<2x128xf32>
    %cst_45 = arith.constant dense<0.000000e+00> : vector<2x128xf32>
    %143 = tpu.matmul %106, %0, %cst_45 {dimension_numbers = #tpu.dot_dimension_numbers<[1], [0], [0], [1], [0, 0, 1, 1], [], []>} : vector<2x32xf32>, vector<32x128xf32>, vector<2x128xf32> -> vector<2x128xf32>
    %144 = arith.addf %142, %143 : vector<2x128xf32>
    %145 = vector.extract_strided_slice %144 {offsets = [0, 0], sizes = [2, 32], strides = [1, 1]} : vector<2x128xf32> to vector<2x32xf32>
    %146 = arith.negf %145 : vector<2x32xf32>
    %147 = math.exp %146 : vector<2x32xf32>
    %cst_46 = arith.constant 1.000000e+00 : f32
    %148 = vector.broadcast %cst_46 : f32 to vector<2x32xf32>
    %149 = arith.addf %148, %147 : vector<2x32xf32>
    %150 = arith.divf %148, %149 : vector<2x32xf32>
    %151 = vector.extract_strided_slice %144 {offsets = [0, 32], sizes = [2, 32], strides = [1, 1]} : vector<2x128xf32> to vector<2x32xf32>
    %152 = arith.negf %151 : vector<2x32xf32>
    %153 = math.exp %152 : vector<2x32xf32>
    %cst_47 = arith.constant 1.000000e+00 : f32
    %154 = vector.broadcast %cst_47 : f32 to vector<2x32xf32>
    %155 = arith.addf %154, %153 : vector<2x32xf32>
    %156 = arith.divf %154, %155 : vector<2x32xf32>
    %157 = vector.extract_strided_slice %144 {offsets = [0, 64], sizes = [2, 32], strides = [1, 1]} : vector<2x128xf32> to vector<2x32xf32>
    %158 = math.tanh %157 : vector<2x32xf32>
    %159 = vector.extract_strided_slice %144 {offsets = [0, 96], sizes = [2, 32], strides = [1, 1]} : vector<2x128xf32> to vector<2x32xf32>
    %160 = arith.negf %159 : vector<2x32xf32>
    %161 = math.exp %160 : vector<2x32xf32>
    %cst_48 = arith.constant 1.000000e+00 : f32
    %162 = vector.broadcast %cst_48 : f32 to vector<2x32xf32>
    %163 = arith.addf %162, %161 : vector<2x32xf32>
    %164 = arith.divf %162, %163 : vector<2x32xf32>
    %165 = arith.mulf %156, %104 : vector<2x32xf32>
    %166 = arith.mulf %150, %158 : vector<2x32xf32>
    %167 = arith.addf %165, %166 : vector<2x32xf32>
    %168 = math.tanh %167 : vector<2x32xf32>
    %169 = arith.mulf %164, %168 : vector<2x32xf32>
    %cst_49 = arith.constant dense<0.000000e+00> : vector<2x128xf32>
    %170 = tpu.matmul %169, %1, %cst_49 {dimension_numbers = #tpu.dot_dimension_numbers<[1], [0], [0], [1], [0, 0, 1, 1], [], []>} : vector<2x32xf32>, vector<32x128xf32>, vector<2x128xf32> -> vector<2x128xf32>
    %cst_50 = arith.constant dense<0.000000e+00> : vector<2x128xf32>
    %171 = tpu.matmul %135, %2, %cst_50 {dimension_numbers = #tpu.dot_dimension_numbers<[1], [0], [0], [1], [0, 0, 1, 1], [], []>} : vector<2x32xf32>, vector<32x128xf32>, vector<2x128xf32> -> vector<2x128xf32>
    %172 = arith.addf %170, %171 : vector<2x128xf32>
    %173 = arith.addf %172, %5 : vector<2x128xf32>
    %174 = vector.extract_strided_slice %173 {offsets = [0, 0], sizes = [2, 32], strides = [1, 1]} : vector<2x128xf32> to vector<2x32xf32>
    %175 = arith.negf %174 : vector<2x32xf32>
    %176 = math.exp %175 : vector<2x32xf32>
    %cst_51 = arith.constant 1.000000e+00 : f32
    %177 = vector.broadcast %cst_51 : f32 to vector<2x32xf32>
    %178 = arith.addf %177, %176 : vector<2x32xf32>
    %179 = arith.divf %177, %178 : vector<2x32xf32>
    %180 = vector.extract_strided_slice %173 {offsets = [0, 32], sizes = [2, 32], strides = [1, 1]} : vector<2x128xf32> to vector<2x32xf32>
    %181 = arith.negf %180 : vector<2x32xf32>
    %182 = math.exp %181 : vector<2x32xf32>
    %cst_52 = arith.constant 1.000000e+00 : f32
    %183 = vector.broadcast %cst_52 : f32 to vector<2x32xf32>
    %184 = arith.addf %183, %182 : vector<2x32xf32>
    %185 = arith.divf %183, %184 : vector<2x32xf32>
    %186 = vector.extract_strided_slice %173 {offsets = [0, 64], sizes = [2, 32], strides = [1, 1]} : vector<2x128xf32> to vector<2x32xf32>
    %187 = math.tanh %186 : vector<2x32xf32>
    %188 = vector.extract_strided_slice %173 {offsets = [0, 96], sizes = [2, 32], strides = [1, 1]} : vector<2x128xf32> to vector<2x32xf32>
    %189 = arith.negf %188 : vector<2x32xf32>
    %190 = math.exp %189 : vector<2x32xf32>
    %cst_53 = arith.constant 1.000000e+00 : f32
    %191 = vector.broadcast %cst_53 : f32 to vector<2x32xf32>
    %192 = arith.addf %191, %190 : vector<2x32xf32>
    %193 = arith.divf %191, %192 : vector<2x32xf32>
    %194 = arith.mulf %185, %133 : vector<2x32xf32>
    %195 = arith.mulf %179, %187 : vector<2x32xf32>
    %196 = arith.addf %194, %195 : vector<2x32xf32>
    %197 = math.tanh %196 : vector<2x32xf32>
    %198 = arith.mulf %193, %197 : vector<2x32xf32>
    %199 = arith.index_cast %c2_i32 : i32 to index
    %c0_54 = arith.constant 0 : index
    %c0_55 = arith.constant 0 : index
    %200 = vector.load %arg7[%199, %c0_54, %c0_55] : memref<4x2x32xf32, #tpu.memory_space<vmem>>, vector<1x2x32xf32>
    %201 = vector.shape_cast %200 : vector<1x2x32xf32> to vector<2x32xf32>
    %202 = vector.shape_cast %198 : vector<2x32xf32> to vector<1x2x32xf32>
    tpu.vector_store %arg7[%199, %c0_54, %c0_55], %202 {strides = array<i32>} : memref<4x2x32xf32, #tpu.memory_space<vmem>>, vector<1x2x32xf32>,
    %c3_i32 = arith.constant 3 : i32
    %203 = arith.index_cast %c3_i32 : i32 to index
    %c0_56 = arith.constant 0 : index
    %c0_57 = arith.constant 0 : index
    %204 = vector.load %arg0[%203, %c0_56, %c0_57] : memref<4x2x128xf32, #tpu.memory_space<vmem>>, vector<1x2x128xf32>
    %205 = vector.shape_cast %204 : vector<1x2x128xf32> to vector<2x128xf32>
    %cst_58 = arith.constant dense<0.000000e+00> : vector<2x128xf32>
    %206 = tpu.matmul %169, %0, %cst_58 {dimension_numbers = #tpu.dot_dimension_numbers<[1], [0], [0], [1], [0, 0, 1, 1], [], []>} : vector<2x32xf32>, vector<32x128xf32>, vector<2x128xf32> -> vector<2x128xf32>
    %207 = arith.addf %205, %206 : vector<2x128xf32>
    %208 = vector.extract_strided_slice %207 {offsets = [0, 0], sizes = [2, 32], strides = [1, 1]} : vector<2x128xf32> to vector<2x32xf32>
    %209 = arith.negf %208 : vector<2x32xf32>
    %210 = math.exp %209 : vector<2x32xf32>
    %cst_59 = arith.constant 1.000000e+00 : f32
    %211 = vector.broadcast %cst_59 : f32 to vector<2x32xf32>
    %212 = arith.addf %211, %210 : vector<2x32xf32>
    %213 = arith.divf %211, %212 : vector<2x32xf32>
    %214 = vector.extract_strided_slice %207 {offsets = [0, 32], sizes = [2, 32], strides = [1, 1]} : vector<2x128xf32> to vector<2x32xf32>
    %215 = arith.negf %214 : vector<2x32xf32>
    %216 = math.exp %215 : vector<2x32xf32>
    %cst_60 = arith.constant 1.000000e+00 : f32
    %217 = vector.broadcast %cst_60 : f32 to vector<2x32xf32>
    %218 = arith.addf %217, %216 : vector<2x32xf32>
    %219 = arith.divf %217, %218 : vector<2x32xf32>
    %220 = vector.extract_strided_slice %207 {offsets = [0, 64], sizes = [2, 32], strides = [1, 1]} : vector<2x128xf32> to vector<2x32xf32>
    %221 = math.tanh %220 : vector<2x32xf32>
    %222 = vector.extract_strided_slice %207 {offsets = [0, 96], sizes = [2, 32], strides = [1, 1]} : vector<2x128xf32> to vector<2x32xf32>
    %223 = arith.negf %222 : vector<2x32xf32>
    %224 = math.exp %223 : vector<2x32xf32>
    %cst_61 = arith.constant 1.000000e+00 : f32
    %225 = vector.broadcast %cst_61 : f32 to vector<2x32xf32>
    %226 = arith.addf %225, %224 : vector<2x32xf32>
    %227 = arith.divf %225, %226 : vector<2x32xf32>
    %228 = arith.mulf %219, %167 : vector<2x32xf32>
    %229 = arith.mulf %213, %221 : vector<2x32xf32>
    %230 = arith.addf %228, %229 : vector<2x32xf32>
    %231 = math.tanh %230 : vector<2x32xf32>
    %232 = arith.mulf %227, %231 : vector<2x32xf32>
    %cst_62 = arith.constant dense<0.000000e+00> : vector<2x128xf32>
    %233 = tpu.matmul %232, %1, %cst_62 {dimension_numbers = #tpu.dot_dimension_numbers<[1], [0], [0], [1], [0, 0, 1, 1], [], []>} : vector<2x32xf32>, vector<32x128xf32>, vector<2x128xf32> -> vector<2x128xf32>
    %cst_63 = arith.constant dense<0.000000e+00> : vector<2x128xf32>
    %234 = tpu.matmul %198, %2, %cst_63 {dimension_numbers = #tpu.dot_dimension_numbers<[1], [0], [0], [1], [0, 0, 1, 1], [], []>} : vector<2x32xf32>, vector<32x128xf32>, vector<2x128xf32> -> vector<2x128xf32>
    %235 = arith.addf %233, %234 : vector<2x128xf32>
    %236 = arith.addf %235, %5 : vector<2x128xf32>
    %237 = vector.extract_strided_slice %236 {offsets = [0, 0], sizes = [2, 32], strides = [1, 1]} : vector<2x128xf32> to vector<2x32xf32>
    %238 = arith.negf %237 : vector<2x32xf32>
    %239 = math.exp %238 : vector<2x32xf32>
    %cst_64 = arith.constant 1.000000e+00 : f32
    %240 = vector.broadcast %cst_64 : f32 to vector<2x32xf32>
    %241 = arith.addf %240, %239 : vector<2x32xf32>
    %242 = arith.divf %240, %241 : vector<2x32xf32>
    %243 = vector.extract_strided_slice %236 {offsets = [0, 32], sizes = [2, 32], strides = [1, 1]} : vector<2x128xf32> to vector<2x32xf32>
    %244 = arith.negf %243 : vector<2x32xf32>
    %245 = math.exp %244 : vector<2x32xf32>
    %cst_65 = arith.constant 1.000000e+00 : f32
    %246 = vector.broadcast %cst_65 : f32 to vector<2x32xf32>
    %247 = arith.addf %246, %245 : vector<2x32xf32>
    %248 = arith.divf %246, %247 : vector<2x32xf32>
    %249 = vector.extract_strided_slice %236 {offsets = [0, 64], sizes = [2, 32], strides = [1, 1]} : vector<2x128xf32> to vector<2x32xf32>
    %250 = math.tanh %249 : vector<2x32xf32>
    %251 = vector.extract_strided_slice %236 {offsets = [0, 96], sizes = [2, 32], strides = [1, 1]} : vector<2x128xf32> to vector<2x32xf32>
    %252 = arith.negf %251 : vector<2x32xf32>
    %253 = math.exp %252 : vector<2x32xf32>
    %cst_66 = arith.constant 1.000000e+00 : f32
    %254 = vector.broadcast %cst_66 : f32 to vector<2x32xf32>
    %255 = arith.addf %254, %253 : vector<2x32xf32>
    %256 = arith.divf %254, %255 : vector<2x32xf32>
    %257 = arith.mulf %248, %196 : vector<2x32xf32>
    %258 = arith.mulf %242, %250 : vector<2x32xf32>
    %259 = arith.addf %257, %258 : vector<2x32xf32>
    %260 = math.tanh %259 : vector<2x32xf32>
    %261 = arith.mulf %256, %260 : vector<2x32xf32>
    %262 = arith.index_cast %c3_i32 : i32 to index
    %c0_67 = arith.constant 0 : index
    %c0_68 = arith.constant 0 : index
    %263 = vector.load %arg7[%262, %c0_67, %c0_68] : memref<4x2x32xf32, #tpu.memory_space<vmem>>, vector<1x2x32xf32>
    %264 = vector.shape_cast %263 : vector<1x2x32xf32> to vector<2x32xf32>
    %265 = vector.shape_cast %261 : vector<2x32xf32> to vector<1x2x32xf32>
    tpu.vector_store %arg7[%262, %c0_67, %c0_68], %265 {strides = array<i32>} : memref<4x2x32xf32, #tpu.memory_space<vmem>>, vector<1x2x32xf32>,
    %c4_i32 = arith.constant 4 : i32
    %c0_69 = arith.constant 0 : index
    %c0_70 = arith.constant 0 : index
    %c0_71 = arith.constant 0 : index
    %266 = vector.load %arg8[%c0_69, %c0_70, %c0_71] : memref<2x2x32xf32, #tpu.memory_space<vmem>>, vector<1x2x32xf32>
    %267 = vector.shape_cast %266 : vector<1x2x32xf32> to vector<2x32xf32>
    %268 = vector.shape_cast %232 : vector<2x32xf32> to vector<1x2x32xf32>
    tpu.vector_store %arg8[%c0_69, %c0_70, %c0_71], %268 {strides = array<i32>} : memref<2x2x32xf32, #tpu.memory_space<vmem>>, vector<1x2x32xf32>,
    %c1_72 = arith.constant 1 : index
    %c0_73 = arith.constant 0 : index
    %c0_74 = arith.constant 0 : index
    %269 = vector.load %arg8[%c1_72, %c0_73, %c0_74] : memref<2x2x32xf32, #tpu.memory_space<vmem>>, vector<1x2x32xf32>
    %270 = vector.shape_cast %269 : vector<1x2x32xf32> to vector<2x32xf32>
    %271 = vector.shape_cast %261 : vector<2x32xf32> to vector<1x2x32xf32>
    tpu.vector_store %arg8[%c1_72, %c0_73, %c0_74], %271 {strides = array<i32>} : memref<2x2x32xf32, #tpu.memory_space<vmem>>, vector<1x2x32xf32>,
    %c0_75 = arith.constant 0 : index
    %c0_76 = arith.constant 0 : index
    %c0_77 = arith.constant 0 : index
    %272 = vector.load %arg9[%c0_75, %c0_76, %c0_77] : memref<2x2x32xf32, #tpu.memory_space<vmem>>, vector<1x2x32xf32>
    %273 = vector.shape_cast %272 : vector<1x2x32xf32> to vector<2x32xf32>
    %274 = vector.shape_cast %230 : vector<2x32xf32> to vector<1x2x32xf32>
    tpu.vector_store %arg9[%c0_75, %c0_76, %c0_77], %274 {strides = array<i32>} : memref<2x2x32xf32, #tpu.memory_space<vmem>>, vector<1x2x32xf32>,
    %c1_78 = arith.constant 1 : index
    %c0_79 = arith.constant 0 : index
    %c0_80 = arith.constant 0 : index
    %275 = vector.load %arg9[%c1_78, %c0_79, %c0_80] : memref<2x2x32xf32, #tpu.memory_space<vmem>>, vector<1x2x32xf32>
    %276 = vector.shape_cast %275 : vector<1x2x32xf32> to vector<2x32xf32>
    %277 = vector.shape_cast %259 : vector<2x32xf32> to vector<1x2x32xf32>
    tpu.vector_store %arg9[%c1_78, %c0_79, %c0_80], %277 {strides = array<i32>} : memref<2x2x32xf32, #tpu.memory_space<vmem>>, vector<1x2x32xf32>,
    return
  }
}

module attributes {stable_mosaic.version = 11 : i64} {
  func.func @attn_kernel(%arg0: memref<8x32xf32, #tpu.memory_space<vmem>>, %arg1: memref<2x8x16xf32, #tpu.memory_space<vmem>>, %arg2: memref<2xi32, #tpu.memory_space<smem>>, %arg3: memref<32x16xf32, #tpu.memory_space<vmem>>, %arg4: memref<16x32xf32, #tpu.memory_space<vmem>>, %arg5: memref<32x32xf32, #tpu.memory_space<vmem>>, %arg6: memref<2x4x32xf32, #tpu.memory_space<vmem>>, %arg7: memref<2x4x8xf32, #tpu.memory_space<vmem>>) attributes {dimension_semantics = [], scalar_prefetch = 0 : i64, scratch_operands = 0 : i64, tpu.core_type = #tpu.core_type<tc>} {
    %c0 = arith.constant 0 : index
    %c0_0 = arith.constant 0 : index
    %0 = vector.load %arg0[%c0, %c0_0] : memref<8x32xf32, #tpu.memory_space<vmem>>, vector<8x32xf32>
    %c0_1 = arith.constant 0 : index
    %c0_2 = arith.constant 0 : index
    %1 = vector.load %arg4[%c0_1, %c0_2] : memref<16x32xf32, #tpu.memory_space<vmem>>, vector<16x32xf32>
    %c0_3 = arith.constant 0 : index
    %c0_4 = arith.constant 0 : index
    %2 = vector.load %arg3[%c0_3, %c0_4] : memref<32x16xf32, #tpu.memory_space<vmem>>, vector<32x16xf32>
    %cst = arith.constant dense<0.000000e+00> : vector<8x16xf32>
    %3 = tpu.matmul %0, %2, %cst {dimension_numbers = #tpu.dot_dimension_numbers<[1], [0], [0], [1], [0, 0, 1, 1], [], []>} : vector<8x32xf32>, vector<32x16xf32>, vector<8x16xf32> -> vector<8x16xf32>
    %c0_5 = arith.constant 0 : index
    %c0_6 = arith.constant 0 : index
    %4 = vector.load %arg5[%c0_5, %c0_6] : memref<32x32xf32, #tpu.memory_space<vmem>>, vector<32x32xf32>
    %cst_7 = arith.constant dense<0.000000e+00> : vector<8x32xf32>
    %5 = tpu.matmul %0, %4, %cst_7 {dimension_numbers = #tpu.dot_dimension_numbers<[1], [0], [0], [1], [0, 0, 1, 1], [], []>} : vector<8x32xf32>, vector<32x32xf32>, vector<8x32xf32> -> vector<8x32xf32>
    %6 = tpu.iota {dimensions = array<i32: 1>} : vector<4x8xi32>
    %7 = vector.extract_strided_slice %3 {offsets = [0, 0], sizes = [4, 16], strides = [1, 1]} : vector<8x16xf32> to vector<4x16xf32>
    %c0_8 = arith.constant 0 : index
    %c0_9 = arith.constant 0 : index
    %c0_10 = arith.constant 0 : index
    %8 = vector.load %arg1[%c0_8, %c0_9, %c0_10] : memref<2x8x16xf32, #tpu.memory_space<vmem>>, vector<1x8x16xf32>
    %9 = vector.shape_cast %8 : vector<1x8x16xf32> to vector<8x16xf32>
    %cst_11 = arith.constant dense<0.000000e+00> : vector<4x8xf32>
    %10 = tpu.matmul %7, %9, %cst_11 {dimension_numbers = #tpu.dot_dimension_numbers<[1], [1], [0], [0], [0, 0, 1, 0], [], []>} : vector<4x16xf32>, vector<8x16xf32>, vector<4x8xf32> -> vector<4x8xf32>
    %c0_12 = arith.constant 0 : index
    %11 = memref.load %arg2[%c0_12] : memref<2xi32, #tpu.memory_space<smem>>
    %12 = vector.broadcast %11 : i32 to vector<4x8xi32>
    %13 = arith.cmpi slt, %6, %12 : vector<4x8xi32>
    %cst_13 = arith.constant 0xFF800000 : f32
    %14 = vector.broadcast %cst_13 : f32 to vector<4x8xf32>
    %15 = arith.select %13, %10, %14 : vector<4x8xi1>, vector<4x8xf32>
    %c0_14 = arith.constant 0 : index
    %c0_15 = arith.constant 0 : index
    %c0_16 = arith.constant 0 : index
    %16 = vector.load %arg7[%c0_14, %c0_15, %c0_16] : memref<2x4x8xf32, #tpu.memory_space<vmem>>, vector<1x4x8xf32>
    %17 = vector.shape_cast %16 : vector<1x4x8xf32> to vector<4x8xf32>
    %18 = vector.shape_cast %15 : vector<4x8xf32> to vector<1x4x8xf32>
    tpu.vector_store %arg7[%c0_14, %c0_15, %c0_16], %18 {strides = array<i32>} : memref<2x4x8xf32, #tpu.memory_space<vmem>>, vector<1x4x8xf32>,
    %19 = arith.negf %15 : vector<4x8xf32>
    %20 = math.exp %19 : vector<4x8xf32>
    %cst_17 = arith.constant 1.000000e+00 : f32
    %21 = vector.broadcast %cst_17 : f32 to vector<4x8xf32>
    %22 = arith.addf %21, %20 : vector<4x8xf32>
    %23 = arith.divf %21, %22 : vector<4x8xf32>
    %cst_18 = arith.constant dense<0.000000e+00> : vector<4x16xf32>
    %24 = tpu.matmul %23, %9, %cst_18 {dimension_numbers = #tpu.dot_dimension_numbers<[1], [0], [0], [1], [0, 0, 1, 1], [], []>} : vector<4x8xf32>, vector<8x16xf32>, vector<4x16xf32> -> vector<4x16xf32>
    %cst_19 = arith.constant dense<0.000000e+00> : vector<4x32xf32>
    %25 = tpu.matmul %24, %1, %cst_19 {dimension_numbers = #tpu.dot_dimension_numbers<[1], [0], [0], [1], [0, 0, 1, 1], [], []>} : vector<4x16xf32>, vector<16x32xf32>, vector<4x32xf32> -> vector<4x32xf32>
    %26 = vector.extract_strided_slice %5 {offsets = [0, 0], sizes = [4, 32], strides = [1, 1]} : vector<8x32xf32> to vector<4x32xf32>
    %27 = arith.addf %25, %26 : vector<4x32xf32>
    %28 = math.tanh %27 : vector<4x32xf32>
    %c0_20 = arith.constant 0 : index
    %c0_21 = arith.constant 0 : index
    %c0_22 = arith.constant 0 : index
    %29 = vector.load %arg6[%c0_20, %c0_21, %c0_22] : memref<2x4x32xf32, #tpu.memory_space<vmem>>, vector<1x4x32xf32>
    %30 = vector.shape_cast %29 : vector<1x4x32xf32> to vector<4x32xf32>
    %31 = vector.shape_cast %28 : vector<4x32xf32> to vector<1x4x32xf32>
    tpu.vector_store %arg6[%c0_20, %c0_21, %c0_22], %31 {strides = array<i32>} : memref<2x4x32xf32, #tpu.memory_space<vmem>>, vector<1x4x32xf32>,
    %32 = vector.extract_strided_slice %3 {offsets = [4, 0], sizes = [4, 16], strides = [1, 1]} : vector<8x16xf32> to vector<4x16xf32>
    %c1 = arith.constant 1 : index
    %c0_23 = arith.constant 0 : index
    %c0_24 = arith.constant 0 : index
    %33 = vector.load %arg1[%c1, %c0_23, %c0_24] : memref<2x8x16xf32, #tpu.memory_space<vmem>>, vector<1x8x16xf32>
    %34 = vector.shape_cast %33 : vector<1x8x16xf32> to vector<8x16xf32>
    %cst_25 = arith.constant dense<0.000000e+00> : vector<4x8xf32>
    %35 = tpu.matmul %32, %34, %cst_25 {dimension_numbers = #tpu.dot_dimension_numbers<[1], [1], [0], [0], [0, 0, 1, 0], [], []>} : vector<4x16xf32>, vector<8x16xf32>, vector<4x8xf32> -> vector<4x8xf32>
    %c1_26 = arith.constant 1 : index
    %36 = memref.load %arg2[%c1_26] : memref<2xi32, #tpu.memory_space<smem>>
    %37 = vector.broadcast %36 : i32 to vector<4x8xi32>
    %38 = arith.cmpi slt, %6, %37 : vector<4x8xi32>
    %cst_27 = arith.constant 0xFF800000 : f32
    %39 = vector.broadcast %cst_27 : f32 to vector<4x8xf32>
    %40 = arith.select %38, %35, %39 : vector<4x8xi1>, vector<4x8xf32>
    %c1_28 = arith.constant 1 : index
    %c0_29 = arith.constant 0 : index
    %c0_30 = arith.constant 0 : index
    %41 = vector.load %arg7[%c1_28, %c0_29, %c0_30] : memref<2x4x8xf32, #tpu.memory_space<vmem>>, vector<1x4x8xf32>
    %42 = vector.shape_cast %41 : vector<1x4x8xf32> to vector<4x8xf32>
    %43 = vector.shape_cast %40 : vector<4x8xf32> to vector<1x4x8xf32>
    tpu.vector_store %arg7[%c1_28, %c0_29, %c0_30], %43 {strides = array<i32>} : memref<2x4x8xf32, #tpu.memory_space<vmem>>, vector<1x4x8xf32>,
    %44 = arith.negf %40 : vector<4x8xf32>
    %45 = math.exp %44 : vector<4x8xf32>
    %cst_31 = arith.constant 1.000000e+00 : f32
    %46 = vector.broadcast %cst_31 : f32 to vector<4x8xf32>
    %47 = arith.addf %46, %45 : vector<4x8xf32>
    %48 = arith.divf %46, %47 : vector<4x8xf32>
    %cst_32 = arith.constant dense<0.000000e+00> : vector<4x16xf32>
    %49 = tpu.matmul %48, %34, %cst_32 {dimension_numbers = #tpu.dot_dimension_numbers<[1], [0], [0], [1], [0, 0, 1, 1], [], []>} : vector<4x8xf32>, vector<8x16xf32>, vector<4x16xf32> -> vector<4x16xf32>
    %cst_33 = arith.constant dense<0.000000e+00> : vector<4x32xf32>
    %50 = tpu.matmul %49, %1, %cst_33 {dimension_numbers = #tpu.dot_dimension_numbers<[1], [0], [0], [1], [0, 0, 1, 1], [], []>} : vector<4x16xf32>, vector<16x32xf32>, vector<4x32xf32> -> vector<4x32xf32>
    %51 = vector.extract_strided_slice %5 {offsets = [4, 0], sizes = [4, 32], strides = [1, 1]} : vector<8x32xf32> to vector<4x32xf32>
    %52 = arith.addf %50, %51 : vector<4x32xf32>
    %53 = math.tanh %52 : vector<4x32xf32>
    %c1_34 = arith.constant 1 : index
    %c0_35 = arith.constant 0 : index
    %c0_36 = arith.constant 0 : index
    %54 = vector.load %arg6[%c1_34, %c0_35, %c0_36] : memref<2x4x32xf32, #tpu.memory_space<vmem>>, vector<1x4x32xf32>
    %55 = vector.shape_cast %54 : vector<1x4x32xf32> to vector<4x32xf32>
    %56 = vector.shape_cast %53 : vector<4x32xf32> to vector<1x4x32xf32>
    tpu.vector_store %arg6[%c1_34, %c0_35, %c0_36], %56 {strides = array<i32>} : memref<2x4x32xf32, #tpu.memory_space<vmem>>, vector<1x4x32xf32>,
    return
  }
}

</mosaic_0001>

<bundles_post_ra>
// kernel: sentence_planner_forward.3
= control target key start
LH: loop header
LB: loop body
LE: loop exit
PB: predicated region body
PF: predicated region fallthrough
CT: control target
= control target key end

     0   :  { %13 = vsyncpa [#allocation3], 0  ;;  %s952_s0 = inlined_call_operand.vmem [shape: f32[8,32], index: 0, kind: input, shape index: {}]   ;;  %s953_s1 = inlined_call_operand.vmem [shape: f32[2,8,16], index: 1, kind: input, shape index: {}]   ;;  %s954_s2 = inlined_call_operand.vmem [shape: s32[2], index: 2, kind: input, shape index: {}]   ;;  %s955_s3 = inlined_call_operand.vmem [shape: f32[32,16], index: 3, kind: input, shape index: {}]   ;;  %s956_s4 = inlined_call_operand.vmem [shape: f32[16,32], index: 4, kind: input, shape index: {}]   ;;  %s957_s5 = inlined_call_operand.vmem [shape: f32[32,32], index: 5, kind: input, shape index: {}]   ;;  %s958_s6 = inlined_call_operand.vmem [shape: f32[2,4,32], index: 6, kind: output, shape index: {0}]   ;;  %s959_s7 = inlined_call_operand.vmem [shape: f32[2,4,8], index: 7, kind: output, shape index: {1}]  }
   0x1   :  { %s24_s26 = sshll.u32 %s954_s2, 4  ;;  %s25_s26 = int_to_ptr.vmem [resolvable:$true] %s24_s26 }
   0x2   :  { %s797_s27 = scalar_lea.vmem %s25_s26, 16  ;;  %p802_p1 = scmp.lt.s32.totalorder %s25_s26, %s25_s26 }
   0x3   :  { %p798_p0 = scmp.ne.s32.totalorder %s25_s26, %s797_s27  ;;  %p803_p2 = scmp.lt.s32.totalorder %s797_s27, %s797_s27 }
   0x5   :  { %p804_p3 = por %p803_p2, %p802_p1 }
   0x7   :  { %p805_p4 = pnand %p804_p3, %p798_p0 }
   0x9   :  { %808 = shalt.err (!%p805_p4)
}
   0xa   :  { %s811_s28 = smov [#allocation2]  }
   0xb   :  { %27 = dma.vmem_to_smem %s25_s26, 16, %s811_s28, [#allocation3]  }
   0xc   :  { %809 = dma.done.wait [#allocation3], 16  }
   0xd   :  { %810 = vsyncadd [#allocation3], 4294967280 }
   0xe   :  { %37 = sfence }
   0xf   :  { %v44_v0 = vld [vmem:[%s955_s3 + $0x18] sm:$0xff]  ;;  %v812_v1 = vmov 0.0   ;;  %v43_v2 = vld [vmem:[%s955_s3 + $0x10] sm:$0xff]  ;;  %vm813_vm0 = vmmov 0   ;;  %v42_v3 = vld [vmem:[%s955_s3 + $0x8] sm:$0xff]  ;;  %vm45_vm1 = vcmask 261120   ;;  %v193_v14 = vlaneseq }
  0x10   :  { %726 = vmatprep.subr.mxu0 %v812_v1  ;;  %734 = vmatprep.mubr.msk.f32.mxu0 %vm813_vm0, %v812_v1  ;;  %v41_v4 = vld [vmem:[%s955_s3] sm:$0xff]  ;;  %vm196_vm2 = vcmask 130048   ;;  %v122_v9 = vld [vmem:[%s957_s5 + $0x18] sm:$0xff]  ;;  %v121_v10 = vld [vmem:[%s957_s5 + $0x10] sm:$0xff]  ;;  %vm277_vm4 = vcmask 60416   ;;  %vm285_vm5 = vcmask 64512  }
  0x11   :  { %727 = vmatpush3.msra.mxu0 %v44_v0  ;;  %737 = vmatprep.subr.mxu1 %v812_v1  ;;  %v38_v5 = vld [vmem:[%s952_s0] sm:$0xff]  ;;  %v120_v11 = vld [vmem:[%s957_s5 + $0x8] sm:$0xff]  ;;  %v194_v15 = vand.u32 127, %v193_v14  ;;  %s696_s30 = sld [smem:[#allocation2 + $0x1]]  ;;  %vm433_vm7 = vcmask 257024  }
  0x12   :  { %728 = vmatprep.subr.mxu0 %v812_v1  ;;  %745 = vmatprep.mubr.msk.f32.mxu1 %vm813_vm0, %v812_v1  ;;  %v195_v6 = vld [vmem:[%s953_s1] sm:$0xff]  ;;  %v40_v13 = vld [vmem:[%s956_s4 + $0x8] sm:$0xff] }
  0x13   :  { %729 = vmatpush3.msra.mxu0 %v43_v2  ;;  %738 = vmatpush3.msra.mxu1 %v122_v9  ;;  %v119_v12 = vld [vmem:[%s957_s5] sm:$0xff]  ;;  %s273_s5 = sld [smem:[#allocation2]]  ;;  %v693_v23 = vld [vmem:[%s953_s1 + $0x8] sm:$0xff] }
  0x14   :  { %730 = vmatprep.subr.mxu0 %v812_v1  ;;  %739 = vmatprep.subr.mxu1 %v812_v1  ;;  %v39_v28 = vld [vmem:[%s956_s4] sm:$0xff] }
  0x15   :  { %731 = vmatpush3.msra.mxu0 %v42_v3  ;;  %740 = vmatpush3.msra.mxu1 %v121_v10 }
  0x16   :  { %732 = vmatprep.subr.mxu0 %v812_v1  ;;  %741 = vmatprep.subr.mxu1 %v812_v1 }
  0x17   :  { %733 = vmatpush3.msra.mxu0 %v41_v4  ;;  %742 = vmatpush3.msra.mxu1 %v120_v11  ;;  %v514_v29 = vstv %s696_s30 }
  0x18   :  { %735 = vmatmul.mubr.msk.f32.vlgmr.msra.gmra.mxu0 %vm45_vm1, %v38_v5  ;;  %748 = vmatprep.subr.mxu0 %v812_v1  ;;  %vm515_vm6 = vcmp.lt.s32.totalorder %v194_v15, %v514_v29 }
  0x19   :  { %749 = vmatpush3.xpose.msk.msra.mxu0 %vm196_vm2, %v195_v6  ;;  %750 = vmatprep.mubr.msk.f32.mxu0 %vm813_vm0, %v812_v1  ;;  %v274_v16 = vstv %s273_s5 }
  0x1a   :  { %758 = vmatprep.subr.mxu0 %v812_v1  ;;  %743 = vmatprep.subr.mxu1 %v812_v1  ;;  %vm275_vm3 = vcmp.lt.s32.totalorder %v194_v15, %v274_v16 }
  0x1b   :  { %744 = vmatpush3.msra.mxu1 %v119_v12 }
  0x1c   :  { %746 = vmatmul.mubr.msk.f32.vlgmr.msra.gmra.mxu1 %vm45_vm1, %v38_v5  ;;  %753 = vmatprep.subr.mxu1 %v812_v1 }
  0x1d   :  { %754 = vmatpush3.msra.mxu1 %v195_v6  ;;  %755 = vmatprep.mubr.msk.f32.mxu1 %vm813_vm0, %v812_v1 }
  0x1e   :  { %765 = vmatprep.subr.mxu1 %v812_v1 }
  0xd8   :  { %v115_v7 = vpop.f32.mrf.mxu0 }
  0xd9   :  { %751 = vmatmul.mubr.msk.f32.vlgmr.msra.gmra.mxu0 %vm196_vm2, %v115_v7  ;;  %v437_v25 = vrot.slane %v115_v7, 4 }
  0xda   :  { %v736_v8 = vpop.f32.mrf.mxu0  ;;  %762 = vmatprep.mubr.msk.f32.mxu0 %vm813_vm0, %v812_v1  ;;  %759 = vmatpush3.msra.mxu0 %v40_v13 }
  0xdb   :  { %760 = vmatprep.subr.mxu0 %v812_v1 }
  0xdc   :  { %v189_v26 = vpop.f32.mrf.mxu1  ;;  %761 = vmatpush3.msra.mxu0 %v39_v28 }
  0xdd   :  { %770 = vmatprep.subr.mxu0 %v812_v1  ;;  %v599_v45 = vrot.slane %v189_v26, 4 }
  0xde   :  { %v747_v27 = vpop.f32.mrf.mxu1 }
 0x199   :  { %v269_v17 = vpop.f32.mrf.mxu0 }
 0x19a   :  { %v276_v18 = vsel %vm275_vm3, %v269_v17, -inf }
 0x19b   :  { %278 = vst.msk [vmem:[%s959_s7] sm:$0xf] %vm277_vm4, %v276_v18  ;;  %v690_v19 = vmul.f32 -1.442695, %v276_v18  ;;  %v752_v20 = vpop.f32.mrf.mxu0 }
 0x19d   :  { %785 = vpow2.f32 %v690_v19 }
 0x1aa   :  { %v786_v21 = vpop.eup %785 }
 0x1ab   :  { %v282_v22 = vadd.f32 1.0, %v786_v21 }
 0x1ad   :  { %787 = vrcp.f32 %v282_v22 }
 0x1ba   :  { %v788_v24 = vpop.eup %787 }
 0x1bb   :  { %756 = vmatmul.mubr.msk.f32.vlgmr.msra.gmra.mxu1 %vm285_vm5, %v788_v24 }
 0x1bc   :  { %766 = vmatpush3.xpose.msk.msra.mxu1 %vm196_vm2, %v693_v23  ;;  %767 = vmatprep.mubr.msk.f32.mxu1 %vm813_vm0, %v812_v1 }
 0x1bd   :  { %775 = vmatprep.subr.mxu1 %v812_v1 }
 0x1bf   :  { %768 = vmatmul.mubr.msk.f32.vlgmr.msra.gmra.mxu1 %vm196_vm2, %v437_v25 }
 0x1c0   :  { %776 = vmatpush3.msra.mxu1 %v40_v13  ;;  %779 = vmatprep.mubr.msk.f32.mxu1 %vm813_vm0, %v812_v1 }
 0x1c1   :  { %777 = vmatprep.subr.mxu1 %v812_v1 }
 0x1c2   :  { %778 = vmatpush3.msra.mxu1 %v39_v28 }
 0x27b   :  { %v355_v30 = vpop.f32.mrf.mxu1 }
 0x27c   :  { %763 = vmatmul.mubr.msk.f32.vlgmr.msra.gmra.mxu0 %vm196_vm2, %v355_v30 }
 0x27d   :  { %v757_v31 = vpop.f32.mrf.mxu1  ;;  %771 = vmatpush3.msra.mxu0 %v693_v23  ;;  %772 = vmatprep.mubr.msk.f32.mxu0 %vm813_vm0, %v812_v1 }
 0x27f   :  { %v509_v32 = vpop.f32.mrf.mxu1 }
 0x280   :  { %v516_v33 = vsel %vm515_vm6, %v509_v32, -inf }
 0x281   :  { %697 = vst.msk [vmem:[%s959_s7 + $0x4] sm:$0xf] %vm277_vm4, %v516_v33  ;;  %v698_v34 = vmul.f32 -1.442695, %v516_v33  ;;  %v769_v35 = vpop.f32.mrf.mxu1 }
 0x283   :  { %789 = vpow2.f32 %v698_v34 }
 0x290   :  { %v790_v36 = vpop.eup %789 }
 0x291   :  { %v522_v37 = vadd.f32 1.0, %v790_v36 }
 0x293   :  { %791 = vrcp.f32 %v522_v37 }
 0x2a0   :  { %v792_v38 = vpop.eup %791 }
 0x2a1   :  { %773 = vmatmul.mubr.msk.f32.vlgmr.msra.gmra.mxu0 %vm285_vm5, %v792_v38 }
 0x33c   :  { %v428_v39 = vpop.f32.mrf.mxu0 }
 0x33d   :  { %v429_v40 = vadd.f32 %v428_v39, %v189_v26 }
 0x33e   :  { %v764_v41 = vpop.f32.mrf.mxu0 }
 0x33f   :  { %793 = vtanh.f32 %v429_v40 }
 0x34c   :  { %v794_v42 = vpop.eup %793 }
 0x34d   :  { %434 = vst.msk [vmem:[%s958_s6] sm:$0xf] %vm433_vm7, %v794_v42 }
 0x361   :  { %v594_v43 = vpop.f32.mrf.mxu0 }
 0x362   :  { %780 = vmatmul.mubr.msk.f32.vlgmr.msra.gmra.mxu1 %vm196_vm2, %v594_v43 }
 0x363   :  { %v774_v44 = vpop.f32.mrf.mxu0 }
 0x422   :  { %v670_v46 = vpop.f32.mrf.mxu1 }
 0x423   :  { %v671_v47 = vadd.f32 %v670_v46, %v599_v45 }
 0x424   :  { %v781_v48 = vpop.f32.mrf.mxu1 }
 0x425   :  { %795 = vtanh.f32 %v671_v47 }
 0x432   :  { %v796_v49 = vpop.eup %795 }
 0x433   :  { %701 = vst.msk [vmem:[%s958_s6 + $0x4] sm:$0xf] %vm433_vm7, %v796_v49 }
 0x434   :  { %685 = vsyncpa [#allocation3], 1 }

// kernel: sentence_planner_forward.2
= control target key start
LH: loop header
LB: loop body
LE: loop exit
PB: predicated region body
PF: predicated region fallthrough
CT: control target
= control target key end

     0   :  { %15 = vsyncpa [#allocation3], 0  ;;  %v1556_v1 = vmov 0.0   ;;  %vm1557_vm0 = vmmov 0   ;;  %s1923_s0 = inlined_call_operand.vmem [shape: f32[4,2,128], index: 0, kind: input, shape index: {}]   ;;  %s1924_s1 = inlined_call_operand.vmem [shape: f32[2,2,32], index: 1, kind: input, shape index: {}]   ;;  %s1925_s2 = inlined_call_operand.vmem [shape: f32[2,2,32], index: 2, kind: input, shape index: {}]   ;;  %s1926_s3 = inlined_call_operand.vmem [shape: f32[32,128], index: 3, kind: input, shape index: {}]   ;;  %s1927_s4 = inlined_call_operand.vmem [shape: f32[32,128], index: 4, kind: input, shape index: {}]   ;;  %s1928_s5 = inlined_call_operand.vmem [shape: f32[32,128], index: 5, kind: input, shape index: {}]   ;;  %s1929_s6 = inlined_call_operand.vmem [shape: f32[1,128], index: 6, kind: input, shape index: {}]   ;;  %s1930_s7 = inlined_call_operand.vmem [shape: f32[4,2,32], index: 7, kind: output, shape index: {0}]   ;;  %s1931_s8 = inlined_call_operand.hbm [shape: f32[2,2,32], index: 8, kind: output, shape index: {1}]   ;;  %s1932_s9 = inlined_call_operand.hbm [shape: f32[2,2,32], index: 9, kind: output, shape index: {2}]  }
   0x1   :  { %v1617_v0 = vld [vmem:[%s1926_s3 + $0x18] sm:$0xff]  ;;  %1308 = vmatprep.subr.mxu0 %v1556_v1  ;;  %v1623_v2 = vld [vmem:[%s1926_s3 + $0x10] sm:$0xff]  ;;  %1316 = vmatprep.mubr.msk.f32.mxu0 %vm1557_vm0, %v1556_v1 }
   0x2   :  { %1309 = vmatpush3.msra.mxu0 %v1617_v0  ;;  %1319 = vmatprep.subr.mxu1 %v1556_v1 }
   0x3   :  { %16 = vsyncpa [#allocation5], 0  ;;  %1310 = vmatprep.subr.mxu0 %v1556_v1  ;;  %v1633_v3 = vld [vmem:[%s1926_s3 + $0x8] sm:$0xff]  ;;  %1327 = vmatprep.mubr.msk.f32.mxu1 %vm1557_vm0, %v1556_v1  ;;  %v1642_v4 = vld [vmem:[%s1926_s3] sm:$0xff]  ;;  %vm57_vm1 = vcmask 261120   ;;  %s1558_s20 = smov 64  }
   0x4   :  { %1311 = vmatpush3.msra.mxu0 %v1623_v2  ;;  %v50_v5 = vld [vmem:[%s1924_s1] sm:$0x3]  ;;  %s1559_s23 = smov 32   ;;  %v1669_v22 = vld [vmem:[%s1928_s5 + $0x18] sm:$0xff]  ;;  %v1674_v23 = vld [vmem:[%s1928_s5 + $0x10] sm:$0xff]  ;;  %vm341_vm2 = vcmask 254976  }
   0x5   :  { %1312 = vmatprep.subr.mxu0 %v1556_v1  ;;  %v56_v6 = vld [vmem:[%s1923_s0] sm:$0x3]  ;;  %1320 = vmatpush3.msra.mxu1 %v1669_v22  ;;  %v1680_v24 = vld [vmem:[%s1927_s4 + $0x18] sm:$0xff]  ;;  %v1686_v25 = vld [vmem:[%s1928_s5 + $0x8] sm:$0xff]  ;;  %s1560_s11 = smov 96   ;;  %s1561_s12 = smov [#allocation2]  }
   0x6   :  { %1313 = vmatpush3.msra.mxu0 %v1633_v3  ;;  %v51_v11 = vld [vmem:[%s1925_s2] sm:$0x3]  ;;  %1321 = vmatprep.subr.mxu1 %v1556_v1  ;;  %v1692_v26 = vld [vmem:[%s1927_s4 + $0x10] sm:$0xff]  ;;  %v1699_v27 = vld [vmem:[%s1927_s4 + $0x8] sm:$0xff]  ;;  %s1190_s13 = sshll.u32 %s1561_s12, 4  ;;  %s1562_s14 = smov [#allocation4]   ;;  %s1191_s13 = int_to_ptr.vmem [resolvable:$true] %s1190_s13 }
   0x7   :  { %1314 = vmatprep.subr.mxu0 %v1556_v1  ;;  %1322 = vmatpush3.msra.mxu1 %v1674_v23  ;;  %v1705_v28 = vld [vmem:[%s1928_s5] sm:$0xff]  ;;  %s1202_s15 = sshll.u32 %s1562_s14, 4  ;;  %p1517_p1 = scmp.lt.s32.totalorder %s1191_s13, %s1191_s13  ;;  %s1203_s15 = int_to_ptr.vmem [resolvable:$true] %s1202_s15 }
   0x8   :  { %1315 = vmatpush3.msra.mxu0 %v1642_v4  ;;  %1323 = vmatprep.subr.mxu1 %v1556_v1  ;;  %v1220_v29 = vld [vmem:[%s1924_s1 + $0x2] sm:$0x3]  ;;  %v1766_v38 = vld [vmem:[%s1929_s6] ss:$0 sm:$0xff] }
   0x9   :  { %1317 = vmatmul.mubr.msk.f32.vlgmr.msra.gmra.mxu0 %vm57_vm1, %v50_v5  ;;  %1330 = vmatprep.subr.mxu0 %v1556_v1  ;;  %v1718_v30 = vld [vmem:[%s1927_s4] sm:$0xff] }
   0xa   :  { %1338 = vmatprep.mubr.msk.f32.mxu0 %vm1557_vm0, %v1556_v1  ;;  %1331 = vmatpush3.msra.mxu0 %v1680_v24  ;;  %v1227_v37 = vld [vmem:[%s1923_s0 + $0x2] sm:$0x3] }
   0xb   :  { %1332 = vmatprep.subr.mxu0 %v1556_v1  ;;  %1324 = vmatpush3.msra.mxu1 %v1686_v25  ;;  %v1221_v48 = vld [vmem:[%s1925_s2 + $0x2] sm:$0x3] }
   0xc   :  { %1333 = vmatpush3.msra.mxu0 %v1692_v26  ;;  %1325 = vmatprep.subr.mxu1 %v1556_v1 }
   0xd   :  { %1334 = vmatprep.subr.mxu0 %v1556_v1  ;;  %1326 = vmatpush3.msra.mxu1 %v1705_v28 }
   0xe   :  { %1335 = vmatpush3.msra.mxu0 %v1699_v27  ;;  %1341 = vmatprep.subr.mxu1 %v1556_v1 }
   0xf   :  { %1336 = vmatprep.subr.mxu0 %v1556_v1  ;;  %1328 = vmatmul.mubr.msk.f32.vlgmr.msra.gmra.mxu1 %vm57_vm1, %v1220_v29 }
  0x10   :  { %1342 = vmatpush3.msra.mxu1 %v1617_v0  ;;  %1337 = vmatpush3.msra.mxu0 %v1718_v30 }
  0x11   :  { %1343 = vmatprep.subr.mxu1 %v1556_v1  ;;  %1349 = vmatprep.mubr.msk.f32.mxu1 %vm1557_vm0, %v1556_v1 }
  0x12   :  { %1344 = vmatpush3.msra.mxu1 %v1623_v2  ;;  %1352 = vmatprep.subr.mxu0 %v1556_v1 }
  0x13   :  { %1345 = vmatprep.subr.mxu1 %v1556_v1 }
  0x14   :  { %1346 = vmatpush3.msra.mxu1 %v1633_v3 }
  0x15   :  { %1347 = vmatprep.subr.mxu1 %v1556_v1 }
  0x16   :  { %1348 = vmatpush3.msra.mxu1 %v1642_v4 }
  0x17   :  { %1363 = vmatprep.subr.mxu1 %v1556_v1 }
  0xc9   :  { %v127_v7 = vpop.f32.mrf.mxu0 }
  0xca   :  { %v131_v8 = vadd.f32 %v127_v7, %v56_v6 }
  0xcb   :  { %v1318_v9 = vpop.f32.mrf.mxu0 }
  0xcc   :  { %1448 = vtanh.f32 %v131_v8  ;;  %v1223_v12 = vmul.f32 -1.442695, %v131_v8 }
  0xce   :  { %1450 = vpow2.f32 %v1223_v12 }
  0xcf   :  { %v229_v34 = vpop.f32.mrf.mxu1 }
  0xd1   :  { %v1329_v35 = vpop.f32.mrf.mxu1 }
  0xd9   :  { %v1449_v10 = vpop.eup %1448 }
  0xda   :  { %145 = vrot.lane.b32.xlu0 %v1449_v10, %s1558_s20 }
  0xdb   :  { %v1451_v13 = vpop.eup %1450 }
  0xdc   :  { %v135_v14 = vadd.f32 1.0, %v1451_v13 }
  0xde   :  { %140 = vrot.lane.b32.xlu0 %v51_v11, %s1559_s23  ;;  %1452 = vrcp.f32 %v135_v14 }
  0xeb   :  { %v1453_v15 = vpop.eup %1452 }
 0x14c   :  { %v146_v16 = vpop.permute.xlu0 %145 }
 0x14d   :  { %v148_v17 = vmul.f32 %v1453_v15, %v146_v16 }
 0x14f   :  { %150 = vrot.lane.b32.xlu1 %v148_v17, %s1559_s23 }
 0x150   :  { %v141_v18 = vpop.permute.xlu0 %140 }
 0x151   :  { %v143_v19 = vmul.f32 %v1453_v15, %v141_v18 }
 0x1c1   :  { %v151_v20 = vpop.permute.xlu1 %150 }
 0x1c2   :  { %v1663_v21 = vadd.f32 %v151_v20, %v143_v19 }
 0x1c4   :  { %1454 = vtanh.f32 %v1663_v21 }
 0x1d1   :  { %v1455_v31 = vpop.eup %1454 }
 0x1d2   :  { %156 = vrot.lane.b32.xlu1 %v1455_v31, %s1558_s20  ;;  %v1234_v31 = vld [vmem:[%s1923_s0 + $0x4] sm:$0x3] }
 0x244   :  { %v157_v32 = vpop.permute.xlu1 %156 }
 0x245   :  { %v159_v33 = vmul.f32 %v1453_v15, %v157_v32 }
 0x247   :  { %234 = vrot.lane.b32.xlu0 %v159_v33, %s1559_s23 }
 0x2b9   :  { %v235_v36 = vpop.permute.xlu0 %234 }
 0x2ba   :  { %1339 = vmatmul.mubr.msk.f32.vlgmr.msra.gmra.mxu0 %vm57_vm1, %v235_v36  ;;  %1350 = vmatmul.mubr.msk.f32.vlgmr.msra.gmra.mxu1 %vm57_vm1, %v235_v36 }
 0x2bb   :  { %1364 = vmatpush3.msra.mxu1 %v1680_v24  ;;  %1353 = vmatpush3.msra.mxu0 %v1669_v22 }
 0x2bc   :  { %1365 = vmatprep.subr.mxu1 %v1556_v1  ;;  %1354 = vmatprep.subr.mxu0 %v1556_v1 }
 0x2bd   :  { %1366 = vmatpush3.msra.mxu1 %v1692_v26  ;;  %1355 = vmatpush3.msra.mxu0 %v1674_v23 }
 0x2be   :  { %1367 = vmatprep.subr.mxu1 %v1556_v1  ;;  %1356 = vmatprep.subr.mxu0 %v1556_v1 }
 0x2bf   :  { %1368 = vmatpush3.msra.mxu1 %v1699_v27  ;;  %1357 = vmatpush3.msra.mxu0 %v1686_v25 }
 0x2c0   :  { %1369 = vmatprep.subr.mxu1 %v1556_v1  ;;  %1358 = vmatprep.subr.mxu0 %v1556_v1 }
 0x2c1   :  { %1370 = vmatpush3.msra.mxu1 %v1718_v30  ;;  %1371 = vmatprep.mubr.msk.f32.mxu1 %vm1557_vm0, %v1556_v1 }
 0x2c2   :  { %1359 = vmatpush3.msra.mxu0 %v1705_v28  ;;  %1360 = vmatprep.mubr.msk.f32.mxu0 %vm1557_vm0, %v1556_v1 }
 0x2c3   :  { %1374 = vmatprep.subr.mxu0 %v1556_v1  ;;  %1385 = vmatprep.subr.mxu1 %v1556_v1 }
 0x37a   :  { %v304_v39 = vpop.f32.mrf.mxu0  ;;  %v411_v40 = vpop.f32.mrf.mxu1 }
 0x37b   :  { %v305_v41 = vadd.f32 %v304_v39, %v229_v34  ;;  %v415_v42 = vadd.f32 %v1227_v37, %v411_v40 }
 0x37c   :  { %v1340_v43 = vpop.f32.mrf.mxu0  ;;  %v1351_v44 = vpop.f32.mrf.mxu1 }
 0x37d   :  { %v308_v45 = vadd.f32 %v1766_v38, %v305_v41  ;;  %1456 = vtanh.f32 %v415_v42  ;;  %v1229_v49 = vmul.f32 -1.442695, %v415_v42 }
 0x37f   :  { %1458 = vtanh.f32 %v308_v45  ;;  %v1226_v50 = vmul.f32 -1.442695, %v308_v45 }
 0x380   :  { %1460 = vpow2.f32 %v1229_v49 }
 0x381   :  { %1462 = vpow2.f32 %v1226_v50 }
 0x38a   :  { %v1457_v46 = vpop.eup %1456 }
 0x38b   :  { %425 = vrot.lane.b32.xlu0 %v1457_v46, %s1558_s20 }
 0x38c   :  { %v1459_v47 = vpop.eup %1458 }
 0x38d   :  { %322 = vrot.lane.b32.xlu1 %v1459_v47, %s1558_s20  ;;  %v1461_v51 = vpop.eup %1460 }
 0x38e   :  { %v1463_v52 = vpop.eup %1462  ;;  %v419_v53 = vadd.f32 1.0, %v1461_v51 }
 0x38f   :  { %v312_v54 = vadd.f32 1.0, %v1463_v52 }
 0x390   :  { %1464 = vrcp.f32 %v419_v53 }
 0x391   :  { %317 = vrot.lane.b32.xlu1 %v1221_v48, %s1559_s23  ;;  %1466 = vrcp.f32 %v312_v54 }
 0x39d   :  { %v1465_v55 = vpop.eup %1464 }
 0x39e   :  { %v1467_v58 = vpop.eup %1466  ;;  %v423_v62 = vmul.f32 %v1465_v55, %v1663_v21 }
 0x3fd   :  { %v426_v56 = vpop.permute.xlu0 %425 }
 0x3fe   :  { %v428_v57 = vmul.f32 %v1465_v55, %v426_v56 }
 0x3ff   :  { %v323_v59 = vpop.permute.xlu1 %322 }
 0x400   :  { %v325_v60 = vmul.f32 %v1467_v58, %v323_v59  ;;  %430 = vrot.lane.b32.xlu1 %v428_v57, %s1559_s23 }
 0x402   :  { %327 = vrot.lane.b32.xlu0 %v325_v60, %s1559_s23 }
 0x403   :  { %v318_v61 = vpop.permute.xlu1 %317 }
 0x404   :  { %v320_v5 = vmul.f32 %v1467_v58, %v318_v61 }
 0x472   :  { %v431_v63 = vpop.permute.xlu1 %430 }
 0x473   :  { %v1778_v6 = vadd.f32 %v431_v63, %v423_v62 }
 0x474   :  { %v328_v7 = vpop.permute.xlu0 %327 }
 0x475   :  { %1468 = vtanh.f32 %v1778_v6  ;;  %v1781_v8 = vadd.f32 %v328_v7, %v320_v5 }
 0x477   :  { %1470 = vtanh.f32 %v1781_v8 }
 0x482   :  { %v1469_v9 = vpop.eup %1468 }
 0x483   :  { %436 = vrot.lane.b32.xlu1 %v1469_v9, %s1558_s20 }
 0x484   :  { %v1471_v10 = vpop.eup %1470 }
 0x485   :  { %333 = vrot.lane.b32.xlu0 %v1471_v10, %s1558_s20 }
 0x4f5   :  { %v437_v11 = vpop.permute.xlu1 %436 }
 0x4f6   :  { %v439_v12 = vmul.f32 %v1465_v55, %v437_v11 }
 0x4f7   :  { %v334_v13 = vpop.permute.xlu0 %333 }
 0x4f8   :  { %v336_v14 = vmul.f32 %v1467_v58, %v334_v13  ;;  %513 = vrot.lane.b32.xlu1 %v439_v12, %s1559_s23 }
 0x4fa   :  { %338 = vrot.lane.b32.xlu0 %v336_v14, %s1559_s23 }
 0x56a   :  { %v514_v15 = vpop.permute.xlu1 %513 }
 0x56b   :  { %1372 = vmatmul.mubr.msk.f32.vlgmr.msra.gmra.mxu1 %vm57_vm1, %v514_v15 }
 0x56c   :  { %v339_v16 = vpop.permute.xlu0 %338  ;;  %1386 = vmatpush3.msra.mxu1 %v1669_v22  ;;  %1393 = vmatprep.mubr.msk.f32.mxu1 %vm1557_vm0, %v1556_v1 }
 0x56d   :  { %342 = vst.msk [vmem:[%s1930_s7] sm:$0x3] %vm341_vm2, %v339_v16  ;;  %1361 = vmatmul.mubr.msk.f32.vlgmr.msra.gmra.mxu0 %vm57_vm1, %v339_v16  ;;  %1387 = vmatprep.subr.mxu1 %v1556_v1 }
 0x56e   :  { %1375 = vmatpush3.msra.mxu0 %v1617_v0  ;;  %1382 = vmatprep.mubr.msk.f32.mxu0 %vm1557_vm0, %v1556_v1 }
 0x56f   :  { %1376 = vmatprep.subr.mxu0 %v1556_v1  ;;  %1388 = vmatpush3.msra.mxu1 %v1674_v23 }
 0x570   :  { %1377 = vmatpush3.msra.mxu0 %v1623_v2  ;;  %1389 = vmatprep.subr.mxu1 %v1556_v1 }
 0x571   :  { %1378 = vmatprep.subr.mxu0 %v1556_v1  ;;  %1390 = vmatpush3.msra.mxu1 %v1686_v25 }
 0x572   :  { %1379 = vmatpush3.msra.mxu0 %v1633_v3  ;;  %1391 = vmatprep.subr.mxu1 %v1556_v1 }
 0x573   :  { %1380 = vmatprep.subr.mxu0 %v1556_v1  ;;  %1392 = vmatpush3.msra.mxu1 %v1705_v28 }
 0x574   :  { %1381 = vmatpush3.msra.mxu0 %v1642_v4  ;;  %1407 = vmatprep.subr.mxu1 %v1556_v1 }
 0x575   :  { %1383 = vmatmul.mubr.msk.f32.vlgmr.msra.gmra.mxu0 %vm57_vm1, %v514_v15  ;;  %1396 = vmatprep.subr.mxu0 %v1556_v1 }
 0x576   :  { %1397 = vmatpush3.msra.mxu0 %v1680_v24  ;;  %1404 = vmatprep.mubr.msk.f32.mxu0 %vm1557_vm0, %v1556_v1 }
 0x577   :  { %1398 = vmatprep.subr.mxu0 %v1556_v1 }
 0x578   :  { %1399 = vmatpush3.msra.mxu0 %v1692_v26 }
 0x579   :  { %1400 = vmatprep.subr.mxu0 %v1556_v1 }
 0x57a   :  { %1401 = vmatpush3.msra.mxu0 %v1699_v27 }
 0x57b   :  { %1402 = vmatprep.subr.mxu0 %v1556_v1 }
 0x57c   :  { %1403 = vmatpush3.msra.mxu0 %v1718_v30 }
 0x57d   :  { %1418 = vmatprep.subr.mxu0 %v1556_v1 }
 0x62b   :  { %v583_v17 = vpop.f32.mrf.mxu1 }
 0x62d   :  { %v508_v18 = vpop.f32.mrf.mxu0  ;;  %v1373_v19 = vpop.f32.mrf.mxu1 }
 0x62e   :  { %v584_v20 = vadd.f32 %v583_v17, %v508_v18 }
 0x62f   :  { %v1362_v21 = vpop.f32.mrf.mxu0 }
 0x630   :  { %v587_v29 = vadd.f32 %v1766_v38, %v584_v20 }
 0x632   :  { %1472 = vtanh.f32 %v587_v29  ;;  %v1232_v37 = vmul.f32 -1.442695, %v587_v29 }
 0x635   :  { %v686_v32 = vpop.f32.mrf.mxu0 }
 0x636   :  { %v690_v33 = vadd.f32 %v1234_v31, %v686_v32 }
 0x637   :  { %v1384_v34 = vpop.f32.mrf.mxu0 }
 0x638   :  { %1474 = vtanh.f32 %v690_v33  ;;  %v1236_v39 = vmul.f32 -1.442695, %v690_v33 }
 0x639   :  { %1476 = vpow2.f32 %v1232_v37 }
 0x63a   :  { %1478 = vpow2.f32 %v1236_v39 }
 0x63f   :  { %v1473_v35 = vpop.eup %1472 }
 0x640   :  { %597 = vrot.lane.b32.xlu0 %v1473_v35, %s1558_s20 }
 0x645   :  { %v1475_v36 = vpop.eup %1474 }
 0x646   :  { %700 = vrot.lane.b32.xlu1 %v1475_v36, %s1558_s20  ;;  %v1477_v40 = vpop.eup %1476 }
 0x647   :  { %v591_v41 = vadd.f32 1.0, %v1477_v40  ;;  %v1479_v42 = vpop.eup %1478 }
 0x648   :  { %v694_v43 = vadd.f32 1.0, %v1479_v42 }
 0x649   :  { %1480 = vrcp.f32 %v591_v41 }
 0x64a   :  { %1482 = vrcp.f32 %v694_v43 }
 0x656   :  { %v1481_v44 = vpop.eup %1480 }
 0x657   :  { %v1483_v47 = vpop.eup %1482  ;;  %v595_v50 = vmul.f32 %v1481_v44, %v1781_v8 }
 0x658   :  { %v698_v53 = vmul.f32 %v1483_v47, %v1778_v6 }
 0x6b2   :  { %v598_v45 = vpop.permute.xlu0 %597 }
 0x6b3   :  { %v600_v46 = vmul.f32 %v1481_v44, %v598_v45 }
 0x6b5   :  { %602 = vrot.lane.b32.xlu0 %v600_v46, %s1559_s23 }
 0x6b8   :  { %v701_v48 = vpop.permute.xlu1 %700 }
 0x6b9   :  { %v703_v49 = vmul.f32 %v1483_v47, %v701_v48 }
 0x6bb   :  { %705 = vrot.lane.b32.xlu1 %v703_v49, %s1559_s23 }
 0x727   :  { %v603_v51 = vpop.permute.xlu0 %602 }
 0x728   :  { %v1834_v52 = vadd.f32 %v603_v51, %v595_v50 }
 0x72a   :  { %1484 = vtanh.f32 %v1834_v52 }
 0x72d   :  { %v706_v54 = vpop.permute.xlu1 %705 }
 0x72e   :  { %v1838_v55 = vadd.f32 %v706_v54, %v698_v53 }
 0x730   :  { %1486 = vtanh.f32 %v1838_v55 }
 0x737   :  { %v1485_v56 = vpop.eup %1484 }
 0x738   :  { %608 = vrot.lane.b32.xlu0 %v1485_v56, %s1558_s20 }
 0x73d   :  { %v1487_v57 = vpop.eup %1486 }
 0x73e   :  { %711 = vrot.lane.b32.xlu1 %v1487_v57, %s1558_s20 }
 0x7aa   :  { %v609_v58 = vpop.permute.xlu0 %608 }
 0x7ab   :  { %v611_v59 = vmul.f32 %v1481_v44, %v609_v58 }
 0x7ad   :  { %613 = vrot.lane.b32.xlu0 %v611_v59, %s1559_s23 }
 0x7b0   :  { %v712_v60 = vpop.permute.xlu1 %711 }
 0x7b1   :  { %v714_v61 = vmul.f32 %v1483_v47, %v712_v60 }
 0x7b3   :  { %788 = vrot.lane.b32.xlu1 %v714_v61, %s1559_s23 }
 0x81f   :  { %v614_v62 = vpop.permute.xlu0 %613 }
 0x820   :  { %1233 = vst.msk [vmem:[%s1930_s7 + $0x2] sm:$0x3] %vm341_vm2, %v614_v62  ;;  %1394 = vmatmul.mubr.msk.f32.vlgmr.msra.gmra.mxu1 %vm57_vm1, %v614_v62 }
 0x821   :  { %1408 = vmatpush3.msra.mxu1 %v1617_v0  ;;  %1415 = vmatprep.mubr.msk.f32.mxu1 %vm1557_vm0, %v1556_v1 }
 0x822   :  { %1409 = vmatprep.subr.mxu1 %v1556_v1 }
 0x823   :  { %1410 = vmatpush3.msra.mxu1 %v1623_v2 }
 0x824   :  { %1411 = vmatprep.subr.mxu1 %v1556_v1 }
 0x825   :  { %1412 = vmatpush3.msra.mxu1 %v1633_v3  ;;  %v789_v63 = vpop.permute.xlu1 %788 }
 0x826   :  { %1405 = vmatmul.mubr.msk.f32.vlgmr.msra.gmra.mxu0 %vm57_vm1, %v789_v63  ;;  %1413 = vmatprep.subr.mxu1 %v1556_v1 }
 0x827   :  { %1414 = vmatpush3.msra.mxu1 %v1642_v4  ;;  %1419 = vmatpush3.msra.mxu0 %v1669_v22  ;;  %v1241_v4 = vld [vmem:[%s1923_s0 + $0x6] sm:$0x3] }
 0x828   :  { %1416 = vmatmul.mubr.msk.f32.vlgmr.msra.gmra.mxu1 %vm57_vm1, %v789_v63  ;;  %1429 = vmatprep.subr.mxu1 %v1556_v1 }
 0x829   :  { %1430 = vmatpush3.msra.mxu1 %v1680_v24  ;;  %1420 = vmatprep.subr.mxu0 %v1556_v1 }
 0x82a   :  { %1431 = vmatprep.subr.mxu1 %v1556_v1  ;;  %1421 = vmatpush3.msra.mxu0 %v1674_v23 }
 0x82b   :  { %1432 = vmatpush3.msra.mxu1 %v1692_v26  ;;  %1422 = vmatprep.subr.mxu0 %v1556_v1 }
 0x82c   :  { %1433 = vmatprep.subr.mxu1 %v1556_v1  ;;  %1423 = vmatpush3.msra.mxu0 %v1686_v25 }
 0x82d   :  { %1434 = vmatpush3.msra.mxu1 %v1699_v27  ;;  %1424 = vmatprep.subr.mxu0 %v1556_v1 }
 0x82e   :  { %1435 = vmatprep.subr.mxu1 %v1556_v1  ;;  %1437 = vmatprep.mubr.msk.f32.mxu1 %vm1557_vm0, %v1556_v1 }
 0x82f   :  { %1436 = vmatpush3.msra.mxu1 %v1718_v30  ;;  %1425 = vmatpush3.msra.mxu0 %v1705_v28 }
 0x830   :  { %1426 = vmatprep.mubr.msk.f32.mxu0 %vm1557_vm0, %v1556_v1 }
 0x8e0   :  { %v783_v0 = vpop.f32.mrf.mxu1 }
 0x8e2   :  { %v1395_v2 = vpop.f32.mrf.mxu1 }
 0x8e6   :  { %v858_v3 = vpop.f32.mrf.mxu0 }
 0x8e7   :  { %v859_v22 = vadd.f32 %v858_v3, %v783_v0 }
 0x8e8   :  { %v1406_v23 = vpop.f32.mrf.mxu0  ;;  %v961_v24 = vpop.f32.mrf.mxu1 }
 0x8e9   :  { %v862_v25 = vadd.f32 %v1766_v38, %v859_v22  ;;  %v965_v26 = vadd.f32 %v1241_v4, %v961_v24 }
 0x8ea   :  { %v1417_v27 = vpop.f32.mrf.mxu1 }
 0x8eb   :  { %1488 = vtanh.f32 %v862_v25  ;;  %v1239_v1 = vmul.f32 -1.442695, %v862_v25  ;;  %v1243_v5 = vmul.f32 -1.442695, %v965_v26 }
 0x8ec   :  { %1490 = vtanh.f32 %v965_v26 }
 0x8ed   :  { %1492 = vpow2.f32 %v1239_v1 }
 0x8ee   :  { %1494 = vpow2.f32 %v1243_v5 }
 0x8f8   :  { %v1489_v28 = vpop.eup %1488 }
 0x8f9   :  { %v1491_v30 = vpop.eup %1490  ;;  %872 = vrot.lane.b32.xlu0 %v1489_v28, %s1558_s20 }
 0x8fa   :  { %975 = vrot.lane.b32.xlu1 %v1491_v30, %s1558_s20  ;;  %v1493_v6 = vpop.eup %1492 }
 0x8fb   :  { %v1495_v7 = vpop.eup %1494  ;;  %v866_v8 = vadd.f32 1.0, %v1493_v6 }
 0x8fc   :  { %v969_v9 = vadd.f32 1.0, %v1495_v7 }
 0x8fd   :  { %1496 = vrcp.f32 %v866_v8 }
 0x8fe   :  { %1498 = vrcp.f32 %v969_v9 }
 0x90a   :  { %v1497_v10 = vpop.eup %1496 }
 0x90b   :  { %v1499_v12 = vpop.eup %1498  ;;  %v870_v16 = vmul.f32 %v1497_v10, %v1834_v52 }
 0x90c   :  { %v973_v17 = vmul.f32 %v1499_v12, %v1838_v55 }
 0x96b   :  { %v873_v11 = vpop.permute.xlu0 %872 }
 0x96c   :  { %v976_v13 = vpop.permute.xlu1 %975  ;;  %v875_v14 = vmul.f32 %v1497_v10, %v873_v11 }
 0x96d   :  { %v978_v15 = vmul.f32 %v1499_v12, %v976_v13 }
 0x96e   :  { %877 = vrot.lane.b32.xlu0 %v875_v14, %s1559_s23 }
 0x96f   :  { %980 = vrot.lane.b32.xlu1 %v978_v15, %s1559_s23 }
 0x9e0   :  { %v878_v18 = vpop.permute.xlu0 %877 }
 0x9e1   :  { %v981_v19 = vpop.permute.xlu1 %980  ;;  %v880_v20 = vadd.f32 %v878_v18, %v870_v16 }
 0x9e2   :  { %v983_v21 = vadd.f32 %v981_v19, %v973_v17 }
 0x9e3   :  { %1500 = vtanh.f32 %v880_v20 }
 0x9e4   :  { %1502 = vtanh.f32 %v983_v21 }
 0x9f0   :  { %v1501_v29 = vpop.eup %1500 }
 0x9f1   :  { %v1503_v31 = vpop.eup %1502  ;;  %883 = vrot.lane.b32.xlu0 %v1501_v29, %s1558_s20 }
 0x9f2   :  { %986 = vrot.lane.b32.xlu1 %v1503_v31, %s1558_s20 }
 0xa63   :  { %v884_v32 = vpop.permute.xlu0 %883 }
 0xa64   :  { %v987_v33 = vpop.permute.xlu1 %986  ;;  %v886_v34 = vmul.f32 %v1497_v10, %v884_v32 }
 0xa65   :  { %v989_v35 = vmul.f32 %v1499_v12, %v987_v33 }
 0xa66   :  { %888 = vrot.lane.b32.xlu0 %v886_v34, %s1559_s23 }
 0xa67   :  { %1063 = vrot.lane.b32.xlu1 %v989_v35, %s1559_s23 }
 0xad8   :  { %v889_v36 = vpop.permute.xlu0 %888 }
 0xad9   :  { %v1064_v37 = vpop.permute.xlu1 %1063  ;;  %1240 = vst.msk [vmem:[%s1930_s7 + $0x4] sm:$0x3] %vm341_vm2, %v889_v36  ;;  %1427 = vmatmul.mubr.msk.f32.vlgmr.msra.gmra.mxu0 %vm57_vm1, %v889_v36 }
 0xada   :  { %1169 = vst.msk [vmem:[#allocation2] sm:$0x3] %vm341_vm2, %v1064_v37  ;;  %1438 = vmatmul.mubr.msk.f32.vlgmr.msra.gmra.mxu1 %vm57_vm1, %v1064_v37 }
 0xb99   :  { %v1058_v39 = vpop.f32.mrf.mxu0 }
 0xb9a   :  { %v1133_v40 = vpop.f32.mrf.mxu1 }
 0xb9b   :  { %v1134_v41 = vadd.f32 %v1133_v40, %v1058_v39  ;;  %v1428_v42 = vpop.f32.mrf.mxu0 }
 0xb9c   :  { %v1439_v43 = vpop.f32.mrf.mxu1 }
 0xb9d   :  { %v1137_v44 = vadd.f32 %v1766_v38, %v1134_v41 }
 0xb9f   :  { %1504 = vtanh.f32 %v1137_v44  ;;  %v1246_v46 = vmul.f32 -1.442695, %v1137_v44 }
 0xba1   :  { %1506 = vpow2.f32 %v1246_v46 }
 0xbac   :  { %v1505_v45 = vpop.eup %1504 }
 0xbad   :  { %1147 = vrot.lane.b32.xlu0 %v1505_v45, %s1558_s20 }
 0xbae   :  { %v1507_v47 = vpop.eup %1506 }
 0xbaf   :  { %v1141_v48 = vadd.f32 1.0, %v1507_v47 }
 0xbb1   :  { %1508 = vrcp.f32 %v1141_v48 }
 0xbbe   :  { %v1509_v49 = vpop.eup %1508 }
 0xbbf   :  { %v1145_v52 = vmul.f32 %v1509_v49, %v880_v20 }
 0xc1f   :  { %v1148_v50 = vpop.permute.xlu0 %1147 }
 0xc20   :  { %v1150_v51 = vmul.f32 %v1509_v49, %v1148_v50 }
 0xc22   :  { %1152 = vrot.lane.b32.xlu1 %v1150_v51, %s1559_s23 }
 0xc94   :  { %v1153_v53 = vpop.permute.xlu1 %1152 }
 0xc95   :  { %v1155_v54 = vadd.f32 %v1153_v53, %v1145_v52 }
 0xc97   :  { %1510 = vtanh.f32 %v1155_v54 }
 0xca4   :  { %v1511_v55 = vpop.eup %1510 }
 0xca5   :  { %1158 = vrot.lane.b32.xlu0 %v1511_v55, %s1558_s20  ;;  %s1512_s20 = scalar_lea.vmem %s1191_s13, 64 }
 0xca6   :  { %p1513_p0 = scmp.ne.s32.totalorder %s1191_s13, %s1512_s20  ;;  %p1518_p2 = scmp.lt.s32.totalorder %s1512_s20, %s1512_s20 }
 0xca8   :  { %p1519_p3 = por %p1518_p2, %p1517_p1 }
 0xca9   :  { %1173 = vrot.lane.b32.xlu0 %v983_v21, %s1560_s11 }
 0xcaa   :  { %p1520_p4 = pnand %p1519_p3, %p1513_p0 }
 0xd17   :  { %v1159_v38 = vpop.permute.xlu0 %1158 }
 0xd18   :  { %v1161_v56 = vmul.f32 %v1509_v49, %v1159_v38 }
 0xd1a   :  { %1163 = vrot.lane.b32.xlu1 %v1161_v56, %s1559_s23 }
 0xd1b   :  { %v1174_v57 = vpop.permute.xlu0 %1173 }
 0xd1c   :  { %1176 = vst.msk [vmem:[#allocation4] sm:$0x3] %vm341_vm2, %v1174_v57 }
 0xd1e   :  { %1178 = vrot.lane.b32.xlu1 %v1155_v54, %s1560_s11 }
 0xd8c   :  { %v1164_v58 = vpop.permute.xlu1 %1163 }
 0xd8d   :  { %1247 = vst.msk [vmem:[%s1930_s7 + $0x6] sm:$0x3] %vm341_vm2, %v1164_v58  ;;  %1171 = vst.msk [vmem:[#allocation2 + $0x2] sm:$0x3] %vm341_vm2, %v1164_v58 }
 0xd8e   :  { %1523 = shalt.err (!%p1520_p4)
}
 0xd8f   :  { %s1563_s18 = smov 2   ;;  %s1532_s7 = scalar_lea.vmem %s1203_s15, 64 }
 0xd90   :  { %1196 = dma.vmem_to_hbm [thread:$0]  %s1191_s13, 64, %s1931_s8, [#allocation3], %s1559_s23, %s1559_s23, %s1563_s18   ;;  %v1179_v59 = vpop.permute.xlu1 %1178 }
 0xd91   :  { %1182 = vst.msk [vmem:[#allocation4 + $0x2] sm:$0x3] %vm341_vm2, %v1179_v59  ;;  %p1533_p5 = scmp.ne.s32.totalorder %s1203_s15, %s1532_s7  ;;  %p1537_p6 = scmp.lt.s32.totalorder %s1203_s15, %s1203_s15 }
 0xd92   :  { %p1538_p7 = scmp.lt.s32.totalorder %s1532_s7, %s1532_s7 }
 0xd94   :  { %p1539_p8 = por %p1538_p7, %p1537_p6 }
 0xd96   :  { %p1540_p9 = pnand %p1539_p8, %p1533_p5 }
 0xd98   :  { %1543 = shalt.err (!%p1540_p9)
}
 0xd99   :  { %1208 = dma.vmem_to_hbm [thread:$0]  %s1203_s15, 64, %s1932_s9, [#allocation5], %s1559_s23, %s1559_s23, %s1563_s18  }
 0xd9a   :  { %1552 = dma.done.wait [#allocation3], 64  }
 0xd9b   :  { %1553 = vsyncadd [#allocation3], 4294967232 }
 0xd9c   :  { %1554 = dma.done.wait [#allocation5], 64  }
 0xd9d   :  { %1555 = vsyncadd [#allocation5], 4294967232 }
 0xd9e   :  { %1217 = vsyncpa [#allocation3], 1 }
 0xd9f   :  { %1218 = vsyncpa [#allocation5], 1 }

</bundles_post_ra>
